<compile_context>
chip_gen: v6e
topology: v6e:2x2x1
jax: 0.10.0
libtpu: 0.0.40
codegen_flags: <defaults>
</compile_context>

<pallas_src>
import jax
import jax.numpy as jnp
from jax.experimental import pallas as pl
from jax.experimental.pallas import tpu as pltpu

# ----------------------------- config ---------------------------------------
K = 4            # config.k               (LSTM input feature size)
HIDDEN = 32      # config.hidden_size
NUM_LAYERS = 2   # config.num_layer
T_HALF = 4       # config.t
SEQ = 2 * T_HALF + 1          # seq_len must equal t*2+1 for mul_linear to apply
INPUT_SIZE = 2 * HIDDEN       # config.input_size must equal 2*hidden_size
BATCH = 2

_VMEM = pl.BlockSpec(memory_space=pltpu.MemorySpace.VMEM)


# --------------------------- packed weight layout -----------------------------
def _round8(n):
    return (n + 7) // 8 * 8


def _packed_layout(seq, hidden, k, num_layers):
    """Row offsets of each section inside the packed [N, 4H] f32 weight slab."""
    off, r = {}, 0
    off["w_in"] = []
    for layer in range(num_layers):
        rows = 2 * k if layer == 0 else 4 * hidden       # direction-doubled input dim
        off["w_in"].append((r, rows))
        r += _round8(rows)
    off["bias"] = []
    for _ in range(num_layers):
        off["bias"].append(r)
        r += 8
    off["a"] = r                                         # collapsed-head coefficients
    r += seq * 8
    off["misc"] = r                                      # [misc, 0] = head bias scalar
    r += 8
    off["rows"] = r
    return off


# --------------------------- fused Pallas kernel ------------------------------
def _make_fused_kernel(batch, seq, hidden, num_layers, lay):
    B, T, H = batch, seq, hidden
    H4, H8 = 4 * hidden, 8 * hidden
    last = num_layers - 1

    def kernel(xstep_ref, packed_ref, whh_ref, out_ref, *scratch):
        xc_ref = scratch[0] if num_layers > 1 else None
        # Constant row selector: rows 0:B are forward, rows B:2B backward.
        row_is_fwd = jax.lax.broadcasted_iota(jnp.int32, (2 * B, 1), 0) < B

        if num_layers > 1:
            # Next-layer step-layout input (direction-doubled width); the column
            # halves / padding rows that are never written must stay zero.
            xc_ref[...] = jnp.zeros((T * 8, H4), jnp.float32)

        acc = jnp.zeros((2 * B, 1), jnp.float32)          # fused-head accumulator

        for layer in range(num_layers):
            # -------- hoisted input->gate projection (both directions at once) ----
            w0, rows = lay["w_in"][layer]
            w_in = packed_ref[w0:w0 + rows, :]                               # [2Din,4H]
            b_blk = packed_ref[lay["bias"][layer]:lay["bias"][layer] + 8, :]  # [8, 4H]
            xin = xstep_ref[...] if layer == 0 else xc_ref[...]              # [T*8,2Din]
            gin = jnp.dot(xin, w_in, preferred_element_type=jnp.float32)
            gin = gin.reshape(T, 8, H4) + b_blk[None, :, :]                  # step layout

            whh = whh_ref[layer * H:(layer + 1) * H, :]                      # [H,8H] bf16

            # -------- fully unrolled joint fwd/bwd recurrence ----------------------
            # state rows 0:B = h_fwd(time s), rows B:2B = h_bwd(time T-1-s)
            for s in range(T):
                g = gin[s, 0:2 * B, :]                                       # [2B, 4H]
                if s > 0:
                    hw = jnp.dot(h.astype(jnp.bfloat16), whh,
                                 preferred_element_type=jnp.float32)         # [2B, 8H]
                    g = g + jnp.where(row_is_fwd, hw[:, 0:H4], hw[:, H4:H8])
                sg = jax.nn.sigmoid(g)              # one EUP pass covers i, f, o
                i_g = sg[:, 0:H]
                f_g = sg[:, H:2 * H]
                o_g = sg[:, 3 * H:4 * H]
                g_g = jnp.tanh(g[:, 2 * H:3 * H])
                c = i_g * g_g if s == 0 else f_g * c + i_g * g_g
                h = o_g * jnp.tanh(c)                                        # [2B, H]

                if layer < last:
                    # Scatter h straight into the NEXT layer's direction-doubled
                    # step-layout input; static indices bake in the time reversal.
                    rf, rb = s * 8, (T - 1 - s) * 8
                    # fwd h(s): fwd-row input of step s, bwd-row input of step T-1-s
                    xc_ref[rf:rf + B, 0:H] = h[0:B, :]
                    xc_ref[rb + B:rb + 2 * B, 2 * H:3 * H] = h[0:B, :]
                    # bwd h(T-1-s): fwd-row input of step T-1-s, bwd-row input of step s
                    xc_ref[rb:rb + B, H:2 * H] = h[B:2 * B, :]
                    xc_ref[rf + B:rf + 2 * B, 3 * H:4 * H] = h[B:2 * B, :]
                else:
                    # Collapsed head: out[b] = sum_{t,j} lstm_out[b,t,j]*A[t,j] + bias.
                    # Off the serial chain: VPU multiply + XLU lane reduce per step.
                    a_blk = packed_ref[lay["a"] + s * 8:
                                       lay["a"] + s * 8 + 2 * B, 0:H]        # [2B, H]
                    acc = acc + jnp.sum(h * a_blk, axis=1, keepdims=True)

        head_bias = packed_ref[lay["misc"]:lay["misc"] + 1, 0:1]             # [1, 1]
        out_ref[...] = acc[0:B, :] + acc[B:2 * B, :] + head_bias             # [B, 1]

    return kernel


# ----------------------------- wrappers --------------------------------------
def prepare_kernel_params(params, batch):
    """One-time repack of the PyTorch-style params into two packed kernel inputs:
      * a [N, 4H] f32 slab: per-layer direction-doubled input projections, per-layer
        bias blocks, the collapsed-head coefficients A, and the head bias scalar;
      * a [L*H, 8H] bf16 slab: recurrent weights [whh_f.T | whh_b.T] per layer.
    Head collapse (exact linear identity):
        out[b] = sum_{t,j} lstm_out[b,t,j] * (v[t]*w_hid[j]) + const,
        v = w_out @ w_mul,  const = b_hid*sum(v) + w_out@b_mul + b_out."""
    layers = params["lstm"]
    num_layers = len(layers)
    H = layers[0][1].shape[1]            # whh_f is [4H, H]
    Kin = layers[0][0].shape[1]          # wih_f is [4H, K]
    T = params["w_mul"].shape[0]
    B = batch
    lay = _packed_layout(T, H, Kin, num_layers)

    packed = jnp.zeros((lay["rows"], 4 * H), jnp.float32)
    whh_rows = []
    for layer, (wih_f, whh_f, b_f, wih_b, whh_b, b_b) in enumerate(layers):
        r0, rows = lay["w_in"][layer]
        w_in = jnp.concatenate([wih_f.T, wih_b.T], axis=0)          # [2*Din, 4H]
        packed = packed.at[r0:r0 + rows, :].set(w_in)
        b_blk = jnp.concatenate(
            [jnp.tile(b_f, (B, 1)), jnp.tile(b_b, (B, 1)),
             jnp.zeros((8 - 2 * B, 4 * H), jnp.float32)], axis=0)   # [8, 4H]
        packed = packed.at[lay["bias"][layer]:lay["bias"][layer] + 8, :].set(b_blk)
        whh_rows.append(jnp.concatenate([whh_f.T, whh_b.T], axis=1))  # [H, 8H]

    # ---- collapsed linear head -------------------------------------------------
    v = (params["w_out"] @ params["w_mul"])[0]                      # [T]
    head_bias = (params["b_hid"][0] * jnp.sum(v)
                 + (params["w_out"] @ params["b_mul"])[0]
                 + params["b_out"][0])
    whid_f = params["w_hid"][0, :H]
    whid_b = params["w_hid"][0, H:]
    a_f = v[:, None, None] * jnp.broadcast_to(whid_f, (T, B, H))    # fwd rows, step s
    a_b = v[::-1][:, None, None] * jnp.broadcast_to(whid_b, (T, B, H))  # bwd rows (t=T-1-s)
    a_blk = jnp.concatenate([a_f, a_b, jnp.zeros((T, 8 - 2 * B, H))], axis=1)
    a_pad = jnp.concatenate([a_blk, jnp.zeros((T, 8, 3 * H))], axis=2)
    packed = packed.at[lay["a"]:lay["a"] + T * 8, :].set(a_pad.reshape(T * 8, 4 * H))
    packed = packed.at[lay["misc"], 0].set(head_bias)

    whh_packed = jnp.concatenate(whh_rows, axis=0).astype(jnp.bfloat16)  # [L*H, 8H]
    return {"packed": packed, "whh": whh_packed}


@jax.jit
def lstm_model_pallas(x, prep):
    if x.ndim == 2:          # mirrors `if x.dim() == 2: x = x.unsqueeze(0)`
        x = x[None]
    B, T, Kin = x.shape
    packed, whh = prep["packed"], prep["whh"]
    H = whh.shape[1] // 8
    num_layers = whh.shape[0] // H
    # hid.squeeze() in the original module also drops the batch dim when B == 1,
    # which changes the head shapes; that path is not supported here.
    assert B > 1, "B == 1 changes `.squeeze()` semantics; not supported"
    assert 2 * B <= 8, "step-layout packing assumes 2*B <= 8 sublanes"

    lay = _packed_layout(T, H, Kin, num_layers)
    assert packed.shape == (lay["rows"], 4 * H), "prep/layout mismatch"

    # Step-layout, direction-doubled input (layout plumbing, built once per call):
    #   time-block s, rows 0:B  -> x[:, s, :]       in cols 0:K   (forward)
    #   time-block s, rows B:2B -> x[:, T-1-s, :]   in cols K:2K  (backward)
    xf = jnp.transpose(x, (1, 0, 2)).astype(jnp.float32)            # [T, B, K]
    xb = xf[::-1]
    zer = jnp.zeros_like(xf)
    x_step = jnp.concatenate(
        [jnp.concatenate([xf, zer], axis=2),
         jnp.concatenate([zer, xb], axis=2),
         jnp.zeros((T, 8 - 2 * B, 2 * Kin), jnp.float32)],
        axis=1).reshape(T * 8, 2 * Kin)

    kernel = _make_fused_kernel(B, T, H, num_layers, lay)
    scratch = [pltpu.VMEM((T * 8, 4 * H), jnp.float32)] if num_layers > 1 else []
    return pl.pallas_call(
        kernel,
        out_shape=jax.ShapeDtypeStruct((B, 1), jnp.float32),
        in_specs=[_VMEM, _VMEM, _VMEM],
        out_specs=_VMEM,
        scratch_shapes=scratch,
    )(x_step, packed, whh)


# -------------------------- pure-JAX reference --------------------------------
def _lstm_direction_ref(x_tbd, wih, whh, b):
    H = wih.shape[0] // 4
    Bq = x_tbd.shape[1]

    def step(carry, x_t):
        h, c = carry
        g = x_t @ wih.T + h @ whh.T + b[0]
        i = jax.nn.sigmoid(g[:, :H])
        f = jax.nn.sigmoid(g[:, H:2 * H])
        gg = jnp.tanh(g[:, 2 * H:3 * H])
        o = jax.nn.sigmoid(g[:, 3 * H:])
        c = f * c + i * gg
        h = o * jnp.tanh(c)
        return (h, c), h

    init = (jnp.zeros((Bq, H), jnp.float32), jnp.zeros((Bq, H), jnp.float32))
    _, hs = jax.lax.scan(step, init, x_tbd)
    return hs


def lstm_model_ref(x, params):
    if x.ndim == 2:
        x = x[None]
    h = jnp.transpose(x, (1, 0, 2))                    # [T, B, F]
    for (wih_f, whh_f, b_f, wih_b, whh_b, b_b) in params["lstm"]:
        hf = _lstm_direction_ref(h, wih_f, whh_f, b_f)
        hb = _lstm_direction_ref(h[::-1], wih_b, whh_b, b_b)[::-1]
        h = jnp.concatenate([hf, hb], axis=-1)
    lstm_out = jnp.transpose(h, (1, 0, 2))             # [B, T, 2H]
    hid = jnp.squeeze(lstm_out @ params["w_hid"].T + params["b_hid"], axis=-1)
    mul = hid @ params["w_mul"].T + params["b_mul"]    # [B, T]
    return mul @ params["w_out"].T + params["b_out"]   # [B, 1]


# ------------------------------ params ----------------------------------------
def init_params(key, k, hidden, num_layers, seq_len, input_size):
    def u(kk, shape, scale):
        return jax.random.uniform(kk, shape, jnp.float32, -scale, scale)

    keys = iter(jax.random.split(key, num_layers * 8 + 6))
    s_lstm = 1.0 / (hidden ** 0.5)
    lstm_layers = []
    for layer in range(num_layers):
        din = k if layer == 0 else 2 * hidden
        wih_f = u(next(keys), (4 * hidden, din), s_lstm)
        whh_f = u(next(keys), (4 * hidden, hidden), s_lstm)
        b_f = (u(next(keys), (1, 4 * hidden), s_lstm)
               + u(next(keys), (1, 4 * hidden), s_lstm))   # b_ih + b_hh
        wih_b = u(next(keys), (4 * hidden, din), s_lstm)
        whh_b = u(next(keys), (4 * hidden, hidden), s_lstm)
        b_b = (u(next(keys), (1, 4 * hidden), s_lstm)
               + u(next(keys), (1, 4 * hidden), s_lstm))
        lstm_layers.append((wih_f, whh_f, b_f, wih_b, whh_b, b_b))

    s_hid = 1.0 / (input_size ** 0.5)
    s_t = 1.0 / (seq_len ** 0.5)
    params = {
        "lstm": lstm_layers,
        "w_hid": u(next(keys), (1, input_size), s_hid),
        "b_hid": u(next(keys), (1,), s_hid),
        "w_mul": u(next(keys), (seq_len, seq_len), s_t),
        "b_mul": u(next(keys), (seq_len,), s_t),
        "w_out": u(next(keys), (1, seq_len), s_t),
        "b_out": u(next(keys), (1,), s_t),
    }
    return params


# ------------------------------- main ------------------------------------------
if __name__ == "__main__":
    key = jax.random.PRNGKey(0)
    kx, kp = jax.random.split(key)
    x = jax.random.normal(kx, (BATCH, SEQ, K), jnp.float32)
    params = init_params(kp, K, HIDDEN, NUM_LAYERS, SEQ, INPUT_SIZE)
    prep = prepare_kernel_params(params, BATCH)   # one-time weight repack (not per call)

    out = lstm_model_pallas(x, prep)
    out = jax.block_until_ready(out)

    ref = lstm_model_ref(x, params)
    assert out.shape == (BATCH, 1), out.shape
    # bf16 recurrent matmuls (per perf review) relax the tolerance slightly vs. the
    # previous all-f32 1e-3 check; genuine bugs show up orders of magnitude larger.
    assert jnp.allclose(out, ref, rtol=1e-2, atol=5e-3), (out, ref)

    print("KERNEL_OK")
</pallas_src>

<mosaic_0001>
module attributes {stable_mosaic.version = 11 : i64} {
  func.func @kernel(%arg0: memref<72x8xf32, #tpu.memory_space<vmem>>, %arg1: memref<232x128xf32, #tpu.memory_space<vmem>>, %arg2: memref<64x256xbf16, #tpu.memory_space<vmem>>, %arg3: memref<2x1xf32, #tpu.memory_space<vmem>>, %arg4: memref<72x128xf32, #tpu.memory_space<vmem>>) attributes {dimension_semantics = [], scalar_prefetch = 0 : i64, scratch_operands = 1 : i64, tpu.core_type = #tpu.core_type<tc>} {
    %0 = tpu.iota {dimensions = array<i32: 0>} : vector<4x1xi32>
    %c2_i32 = arith.constant 2 : i32
    %1 = vector.broadcast %c2_i32 : i32 to vector<4x1xi32>
    %2 = arith.cmpi slt, %0, %1 : vector<4x1xi32>
    %cst = arith.constant 0.000000e+00 : f32
    %3 = vector.broadcast %cst : f32 to vector<72x128xf32>
    %c0 = arith.constant 0 : index
    %c0_0 = arith.constant 0 : index
    %4 = vector.load %arg4[%c0, %c0_0] : memref<72x128xf32, #tpu.memory_space<vmem>>, vector<72x128xf32>
    tpu.vector_store %arg4[%c0, %c0_0], %3 {strides = array<i32>} : memref<72x128xf32, #tpu.memory_space<vmem>>, vector<72x128xf32>,
    %cst_1 = arith.constant 0.000000e+00 : f32
    %5 = vector.broadcast %cst_1 : f32 to vector<4x1xf32>
    %c0_2 = arith.constant 0 : index
    %c0_3 = arith.constant 0 : index
    %6 = vector.load %arg1[%c0_2, %c0_3] : memref<232x128xf32, #tpu.memory_space<vmem>>, vector<8x128xf32>
    %c136 = arith.constant 136 : index
    %c0_4 = arith.constant 0 : index
    %7 = vector.load %arg1[%c136, %c0_4] : memref<232x128xf32, #tpu.memory_space<vmem>>, vector<8x128xf32>
    %c0_5 = arith.constant 0 : index
    %c0_6 = arith.constant 0 : index
    %8 = vector.load %arg0[%c0_5, %c0_6] : memref<72x8xf32, #tpu.memory_space<vmem>>, vector<72x8xf32>
    %cst_7 = arith.constant dense<0.000000e+00> : vector<72x128xf32>
    %9 = tpu.matmul %8, %6, %cst_7 {dimension_numbers = #tpu.dot_dimension_numbers<[1], [0], [0], [1], [0, 0, 1, 1], [], []>} : vector<72x8xf32>, vector<8x128xf32>, vector<72x128xf32> -> vector<72x128xf32>
    %10 = vector.shape_cast %9 : vector<72x128xf32> to vector<9x8x128xf32>
    %11 = vector.shape_cast %7 : vector<8x128xf32> to vector<1x8x128xf32>
    %12 = vector.broadcast %11 : vector<1x8x128xf32> to vector<9x8x128xf32>
    %13 = arith.addf %10, %12 : vector<9x8x128xf32>
    %c0_8 = arith.constant 0 : index
    %c0_9 = arith.constant 0 : index
    %14 = vector.load %arg2[%c0_8, %c0_9] : memref<64x256xbf16, #tpu.memory_space<vmem>>, vector<32x256xbf16>
    %15 = vector.extract_strided_slice %13 {offsets = [0, 0, 0], sizes = [1, 4, 128], strides = [1, 1, 1]} : vector<9x8x128xf32> to vector<1x4x128xf32>
    %16 = vector.shape_cast %15 : vector<1x4x128xf32> to vector<4x128xf32>
    %17 = arith.negf %16 : vector<4x128xf32>
    %18 = math.exp %17 : vector<4x128xf32>
    %cst_10 = arith.constant 1.000000e+00 : f32
    %19 = vector.broadcast %cst_10 : f32 to vector<4x128xf32>
    %20 = arith.addf %19, %18 : vector<4x128xf32>
    %21 = arith.divf %19, %20 : vector<4x128xf32>
    %22 = vector.extract_strided_slice %21 {offsets = [0, 0], sizes = [4, 32], strides = [1, 1]} : vector<4x128xf32> to vector<4x32xf32>
    %23 = vector.extract_strided_slice %21 {offsets = [0, 96], sizes = [4, 32], strides = [1, 1]} : vector<4x128xf32> to vector<4x32xf32>
    %24 = vector.extract_strided_slice %16 {offsets = [0, 64], sizes = [4, 32], strides = [1, 1]} : vector<4x128xf32> to vector<4x32xf32>
    %25 = math.tanh %24 : vector<4x32xf32>
    %26 = arith.mulf %22, %25 : vector<4x32xf32>
    %27 = math.tanh %26 : vector<4x32xf32>
    %28 = arith.mulf %23, %27 : vector<4x32xf32>
    %29 = vector.extract_strided_slice %28 {offsets = [0, 0], sizes = [2, 32], strides = [1, 1]} : vector<4x32xf32> to vector<2x32xf32>
    %c0_11 = arith.constant 0 : index
    %c0_12 = arith.constant 0 : index
    %30 = vector.load %arg4[%c0_11, %c0_12] : memref<72x128xf32, #tpu.memory_space<vmem>>, vector<2x32xf32>
    tpu.vector_store %arg4[%c0_11, %c0_12], %29 {strides = array<i32>} : memref<72x128xf32, #tpu.memory_space<vmem>>, vector<2x32xf32>,
    %31 = vector.extract_strided_slice %28 {offsets = [0, 0], sizes = [2, 32], strides = [1, 1]} : vector<4x32xf32> to vector<2x32xf32>
    %c66 = arith.constant 66 : index
    %c64 = arith.constant 64 : index
    %32 = vector.load %arg4[%c66, %c64] : memref<72x128xf32, #tpu.memory_space<vmem>>, vector<2x32xf32>
    tpu.vector_store %arg4[%c66, %c64], %31 {strides = array<i32>} : memref<72x128xf32, #tpu.memory_space<vmem>>, vector<2x32xf32>,
    %33 = vector.extract_strided_slice %28 {offsets = [2, 0], sizes = [2, 32], strides = [1, 1]} : vector<4x32xf32> to vector<2x32xf32>
    %c64_13 = arith.constant 64 : index
    %c32 = arith.constant 32 : index
    %34 = vector.load %arg4[%c64_13, %c32] : memref<72x128xf32, #tpu.memory_space<vmem>>, vector<2x32xf32>
    tpu.vector_store %arg4[%c64_13, %c32], %33 {strides = array<i32>} : memref<72x128xf32, #tpu.memory_space<vmem>>, vector<2x32xf32>,
    %35 = vector.extract_strided_slice %28 {offsets = [2, 0], sizes = [2, 32], strides = [1, 1]} : vector<4x32xf32> to vector<2x32xf32>
    %c2 = arith.constant 2 : index
    %c96 = arith.constant 96 : index
    %36 = vector.load %arg4[%c2, %c96] : memref<72x128xf32, #tpu.memory_space<vmem>>, vector<2x32xf32>
    tpu.vector_store %arg4[%c2, %c96], %35 {strides = array<i32>} : memref<72x128xf32, #tpu.memory_space<vmem>>, vector<2x32xf32>,
    %37 = vector.extract_strided_slice %13 {offsets = [1, 0, 0], sizes = [1, 4, 128], strides = [1, 1, 1]} : vector<9x8x128xf32> to vector<1x4x128xf32>
    %38 = vector.shape_cast %37 : vector<1x4x128xf32> to vector<4x128xf32>
    %39 = arith.truncf %28 : vector<4x32xf32> to vector<4x32xbf16>
    %cst_14 = arith.constant dense<0.000000e+00> : vector<4x256xf32>
    %40 = tpu.matmul %39, %14, %cst_14 {dimension_numbers = #tpu.dot_dimension_numbers<[1], [0], [0], [1], [0, 0, 1, 1], [], []>} : vector<4x32xbf16>, vector<32x256xbf16>, vector<4x256xf32> -> vector<4x256xf32>
    %41 = vector.extract_strided_slice %40 {offsets = [0, 0], sizes = [4, 128], strides = [1, 1]} : vector<4x256xf32> to vector<4x128xf32>
    %42 = vector.extract_strided_slice %40 {offsets = [0, 128], sizes = [4, 128], strides = [1, 1]} : vector<4x256xf32> to vector<4x128xf32>
    %43 = vector.shape_cast %2 : vector<4x1xi1> to vector<4x1xi1>
    %44 = vector.broadcast %43 : vector<4x1xi1> to vector<4x128xi1>
    %45 = arith.select %44, %41, %42 : vector<4x128xi1>, vector<4x128xf32>
    %46 = arith.addf %38, %45 : vector<4x128xf32>
    %47 = arith.negf %46 : vector<4x128xf32>
    %48 = math.exp %47 : vector<4x128xf32>
    %cst_15 = arith.constant 1.000000e+00 : f32
    %49 = vector.broadcast %cst_15 : f32 to vector<4x128xf32>
    %50 = arith.addf %49, %48 : vector<4x128xf32>
    %51 = arith.divf %49, %50 : vector<4x128xf32>
    %52 = vector.extract_strided_slice %51 {offsets = [0, 0], sizes = [4, 32], strides = [1, 1]} : vector<4x128xf32> to vector<4x32xf32>
    %53 = vector.extract_strided_slice %51 {offsets = [0, 32], sizes = [4, 32], strides = [1, 1]} : vector<4x128xf32> to vector<4x32xf32>
    %54 = vector.extract_strided_slice %51 {offsets = [0, 96], sizes = [4, 32], strides = [1, 1]} : vector<4x128xf32> to vector<4x32xf32>
    %55 = vector.extract_strided_slice %46 {offsets = [0, 64], sizes = [4, 32], strides = [1, 1]} : vector<4x128xf32> to vector<4x32xf32>
    %56 = math.tanh %55 : vector<4x32xf32>
    %57 = arith.mulf %53, %26 : vector<4x32xf32>
    %58 = arith.mulf %52, %56 : vector<4x32xf32>
    %59 = arith.addf %57, %58 : vector<4x32xf32>
    %60 = math.tanh %59 : vector<4x32xf32>
    %61 = arith.mulf %54, %60 : vector<4x32xf32>
    %62 = vector.extract_strided_slice %61 {offsets = [0, 0], sizes = [2, 32], strides = [1, 1]} : vector<4x32xf32> to vector<2x32xf32>
    %c8 = arith.constant 8 : index
    %c0_16 = arith.constant 0 : index
    %63 = vector.load %arg4[%c8, %c0_16] : memref<72x128xf32, #tpu.memory_space<vmem>>, vector<2x32xf32>
    tpu.vector_store %arg4[%c8, %c0_16], %62 {strides = array<i32>} : memref<72x128xf32, #tpu.memory_space<vmem>>, vector<2x32xf32>,
    %64 = vector.extract_strided_slice %61 {offsets = [0, 0], sizes = [2, 32], strides = [1, 1]} : vector<4x32xf32> to vector<2x32xf32>
    %c58 = arith.constant 58 : index
    %c64_17 = arith.constant 64 : index
    %65 = vector.load %arg4[%c58, %c64_17] : memref<72x128xf32, #tpu.memory_space<vmem>>, vector<2x32xf32>
    tpu.vector_store %arg4[%c58, %c64_17], %64 {strides = array<i32>} : memref<72x128xf32, #tpu.memory_space<vmem>>, vector<2x32xf32>,
    %66 = vector.extract_strided_slice %61 {offsets = [2, 0], sizes = [2, 32], strides = [1, 1]} : vector<4x32xf32> to vector<2x32xf32>
    %c56 = arith.constant 56 : index
    %c32_18 = arith.constant 32 : index
    %67 = vector.load %arg4[%c56, %c32_18] : memref<72x128xf32, #tpu.memory_space<vmem>>, vector<2x32xf32>
    tpu.vector_store %arg4[%c56, %c32_18], %66 {strides = array<i32>} : memref<72x128xf32, #tpu.memory_space<vmem>>, vector<2x32xf32>,
    %68 = vector.extract_strided_slice %61 {offsets = [2, 0], sizes = [2, 32], strides = [1, 1]} : vector<4x32xf32> to vector<2x32xf32>
    %c10 = arith.constant 10 : index
    %c96_19 = arith.constant 96 : index
    %69 = vector.load %arg4[%c10, %c96_19] : memref<72x128xf32, #tpu.memory_space<vmem>>, vector<2x32xf32>
    tpu.vector_store %arg4[%c10, %c96_19], %68 {strides = array<i32>} : memref<72x128xf32, #tpu.memory_space<vmem>>, vector<2x32xf32>,
    %70 = vector.extract_strided_slice %13 {offsets = [2, 0, 0], sizes = [1, 4, 128], strides = [1, 1, 1]} : vector<9x8x128xf32> to vector<1x4x128xf32>
    %71 = vector.shape_cast %70 : vector<1x4x128xf32> to vector<4x128xf32>
    %72 = arith.truncf %61 : vector<4x32xf32> to vector<4x32xbf16>
    %cst_20 = arith.constant dense<0.000000e+00> : vector<4x256xf32>
    %73 = tpu.matmul %72, %14, %cst_20 {dimension_numbers = #tpu.dot_dimension_numbers<[1], [0], [0], [1], [0, 0, 1, 1], [], []>} : vector<4x32xbf16>, vector<32x256xbf16>, vector<4x256xf32> -> vector<4x256xf32>
    %74 = vector.extract_strided_slice %73 {offsets = [0, 0], sizes = [4, 128], strides = [1, 1]} : vector<4x256xf32> to vector<4x128xf32>
    %75 = vector.extract_strided_slice %73 {offsets = [0, 128], sizes = [4, 128], strides = [1, 1]} : vector<4x256xf32> to vector<4x128xf32>
    %76 = vector.shape_cast %2 : vector<4x1xi1> to vector<4x1xi1>
    %77 = vector.broadcast %76 : vector<4x1xi1> to vector<4x128xi1>
    %78 = arith.select %77, %74, %75 : vector<4x128xi1>, vector<4x128xf32>
    %79 = arith.addf %71, %78 : vector<4x128xf32>
    %80 = arith.negf %79 : vector<4x128xf32>
    %81 = math.exp %80 : vector<4x128xf32>
    %cst_21 = arith.constant 1.000000e+00 : f32
    %82 = vector.broadcast %cst_21 : f32 to vector<4x128xf32>
    %83 = arith.addf %82, %81 : vector<4x128xf32>
    %84 = arith.divf %82, %83 : vector<4x128xf32>
    %85 = vector.extract_strided_slice %84 {offsets = [0, 0], sizes = [4, 32], strides = [1, 1]} : vector<4x128xf32> to vector<4x32xf32>
    %86 = vector.extract_strided_slice %84 {offsets = [0, 32], sizes = [4, 32], strides = [1, 1]} : vector<4x128xf32> to vector<4x32xf32>
    %87 = vector.extract_strided_slice %84 {offsets = [0, 96], sizes = [4, 32], strides = [1, 1]} : vector<4x128xf32> to vector<4x32xf32>
    %88 = vector.extract_strided_slice %79 {offsets = [0, 64], sizes = [4, 32], strides = [1, 1]} : vector<4x128xf32> to vector<4x32xf32>
    %89 = math.tanh %88 : vector<4x32xf32>
    %90 = arith.mulf %86, %59 : vector<4x32xf32>
    %91 = arith.mulf %85, %89 : vector<4x32xf32>
    %92 = arith.addf %90, %91 : vector<4x32xf32>
    %93 = math.tanh %92 : vector<4x32xf32>
    %94 = arith.mulf %87, %93 : vector<4x32xf32>
    %95 = vector.extract_strided_slice %94 {offsets = [0, 0], sizes = [2, 32], strides = [1, 1]} : vector<4x32xf32> to vector<2x32xf32>
    %c16 = arith.constant 16 : index
    %c0_22 = arith.constant 0 : index
    %96 = vector.load %arg4[%c16, %c0_22] : memref<72x128xf32, #tpu.memory_space<vmem>>, vector<2x32xf32>
    tpu.vector_store %arg4[%c16, %c0_22], %95 {strides = array<i32>} : memref<72x128xf32, #tpu.memory_space<vmem>>, vector<2x32xf32>,
    %97 = vector.extract_strided_slice %94 {offsets = [0, 0], sizes = [2, 32], strides = [1, 1]} : vector<4x32xf32> to vector<2x32xf32>
    %c50 = arith.constant 50 : index
    %c64_23 = arith.constant 64 : index
    %98 = vector.load %arg4[%c50, %c64_23] : memref<72x128xf32, #tpu.memory_space<vmem>>, vector<2x32xf32>
    tpu.vector_store %arg4[%c50, %c64_23], %97 {strides = array<i32>} : memref<72x128xf32, #tpu.memory_space<vmem>>, vector<2x32xf32>,
    %99 = vector.extract_strided_slice %94 {offsets = [2, 0], sizes = [2, 32], strides = [1, 1]} : vector<4x32xf32> to vector<2x32xf32>
    %c48 = arith.constant 48 : index
    %c32_24 = arith.constant 32 : index
    %100 = vector.load %arg4[%c48, %c32_24] : memref<72x128xf32, #tpu.memory_space<vmem>>, vector<2x32xf32>
    tpu.vector_store %arg4[%c48, %c32_24], %99 {strides = array<i32>} : memref<72x128xf32, #tpu.memory_space<vmem>>, vector<2x32xf32>,
    %101 = vector.extract_strided_slice %94 {offsets = [2, 0], sizes = [2, 32], strides = [1, 1]} : vector<4x32xf32> to vector<2x32xf32>
    %c18 = arith.constant 18 : index
    %c96_25 = arith.constant 96 : index
    %102 = vector.load %arg4[%c18, %c96_25] : memref<72x128xf32, #tpu.memory_space<vmem>>, vector<2x32xf32>
    tpu.vector_store %arg4[%c18, %c96_25], %101 {strides = array<i32>} : memref<72x128xf32, #tpu.memory_space<vmem>>, vector<2x32xf32>,
    %103 = vector.extract_strided_slice %13 {offsets = [3, 0, 0], sizes = [1, 4, 128], strides = [1, 1, 1]} : vector<9x8x128xf32> to vector<1x4x128xf32>
    %104 = vector.shape_cast %103 : vector<1x4x128xf32> to vector<4x128xf32>
    %105 = arith.truncf %94 : vector<4x32xf32> to vector<4x32xbf16>
    %cst_26 = arith.constant dense<0.000000e+00> : vector<4x256xf32>
    %106 = tpu.matmul %105, %14, %cst_26 {dimension_numbers = #tpu.dot_dimension_numbers<[1], [0], [0], [1], [0, 0, 1, 1], [], []>} : vector<4x32xbf16>, vector<32x256xbf16>, vector<4x256xf32> -> vector<4x256xf32>
    %107 = vector.extract_strided_slice %106 {offsets = [0, 0], sizes = [4, 128], strides = [1, 1]} : vector<4x256xf32> to vector<4x128xf32>
    %108 = vector.extract_strided_slice %106 {offsets = [0, 128], sizes = [4, 128], strides = [1, 1]} : vector<4x256xf32> to vector<4x128xf32>
    %109 = vector.shape_cast %2 : vector<4x1xi1> to vector<4x1xi1>
    %110 = vector.broadcast %109 : vector<4x1xi1> to vector<4x128xi1>
    %111 = arith.select %110, %107, %108 : vector<4x128xi1>, vector<4x128xf32>
    %112 = arith.addf %104, %111 : vector<4x128xf32>
    %113 = arith.negf %112 : vector<4x128xf32>
    %114 = math.exp %113 : vector<4x128xf32>
    %cst_27 = arith.constant 1.000000e+00 : f32
    %115 = vector.broadcast %cst_27 : f32 to vector<4x128xf32>
    %116 = arith.addf %115, %114 : vector<4x128xf32>
    %117 = arith.divf %115, %116 : vector<4x128xf32>
    %118 = vector.extract_strided_slice %117 {offsets = [0, 0], sizes = [4, 32], strides = [1, 1]} : vector<4x128xf32> to vector<4x32xf32>
    %119 = vector.extract_strided_slice %117 {offsets = [0, 32], sizes = [4, 32], strides = [1, 1]} : vector<4x128xf32> to vector<4x32xf32>
    %120 = vector.extract_strided_slice %117 {offsets = [0, 96], sizes = [4, 32], strides = [1, 1]} : vector<4x128xf32> to vector<4x32xf32>
    %121 = vector.extract_strided_slice %112 {offsets = [0, 64], sizes = [4, 32], strides = [1, 1]} : vector<4x128xf32> to vector<4x32xf32>
    %122 = math.tanh %121 : vector<4x32xf32>
    %123 = arith.mulf %119, %92 : vector<4x32xf32>
    %124 = arith.mulf %118, %122 : vector<4x32xf32>
    %125 = arith.addf %123, %124 : vector<4x32xf32>
    %126 = math.tanh %125 : vector<4x32xf32>
    %127 = arith.mulf %120, %126 : vector<4x32xf32>
    %128 = vector.extract_strided_slice %127 {offsets = [0, 0], sizes = [2, 32], strides = [1, 1]} : vector<4x32xf32> to vector<2x32xf32>
    %c24 = arith.constant 24 : index
    %c0_28 = arith.constant 0 : index
    %129 = vector.load %arg4[%c24, %c0_28] : memref<72x128xf32, #tpu.memory_space<vmem>>, vector<2x32xf32>
    tpu.vector_store %arg4[%c24, %c0_28], %128 {strides = array<i32>} : memref<72x128xf32, #tpu.memory_space<vmem>>, vector<2x32xf32>,
    %130 = vector.extract_strided_slice %127 {offsets = [0, 0], sizes = [2, 32], strides = [1, 1]} : vector<4x32xf32> to vector<2x32xf32>
    %c42 = arith.constant 42 : index
    %c64_29 = arith.constant 64 : index
    %131 = vector.load %arg4[%c42, %c64_29] : memref<72x128xf32, #tpu.memory_space<vmem>>, vector<2x32xf32>
    tpu.vector_store %arg4[%c42, %c64_29], %130 {strides = array<i32>} : memref<72x128xf32, #tpu.memory_space<vmem>>, vector<2x32xf32>,
    %132 = vector.extract_strided_slice %127 {offsets = [2, 0], sizes = [2, 32], strides = [1, 1]} : vector<4x32xf32> to vector<2x32xf32>
    %c40 = arith.constant 40 : index
    %c32_30 = arith.constant 32 : index
    %133 = vector.load %arg4[%c40, %c32_30] : memref<72x128xf32, #tpu.memory_space<vmem>>, vector<2x32xf32>
    tpu.vector_store %arg4[%c40, %c32_30], %132 {strides = array<i32>} : memref<72x128xf32, #tpu.memory_space<vmem>>, vector<2x32xf32>,
    %134 = vector.extract_strided_slice %127 {offsets = [2, 0], sizes = [2, 32], strides = [1, 1]} : vector<4x32xf32> to vector<2x32xf32>
    %c26 = arith.constant 26 : index
    %c96_31 = arith.constant 96 : index
    %135 = vector.load %arg4[%c26, %c96_31] : memref<72x128xf32, #tpu.memory_space<vmem>>, vector<2x32xf32>
    tpu.vector_store %arg4[%c26, %c96_31], %134 {strides = array<i32>} : memref<72x128xf32, #tpu.memory_space<vmem>>, vector<2x32xf32>,
    %136 = vector.extract_strided_slice %13 {offsets = [4, 0, 0], sizes = [1, 4, 128], strides = [1, 1, 1]} : vector<9x8x128xf32> to vector<1x4x128xf32>
    %137 = vector.shape_cast %136 : vector<1x4x128xf32> to vector<4x128xf32>
    %138 = arith.truncf %127 : vector<4x32xf32> to vector<4x32xbf16>
    %cst_32 = arith.constant dense<0.000000e+00> : vector<4x256xf32>
    %139 = tpu.matmul %138, %14, %cst_32 {dimension_numbers = #tpu.dot_dimension_numbers<[1], [0], [0], [1], [0, 0, 1, 1], [], []>} : vector<4x32xbf16>, vector<32x256xbf16>, vector<4x256xf32> -> vector<4x256xf32>
    %140 = vector.extract_strided_slice %139 {offsets = [0, 0], sizes = [4, 128], strides = [1, 1]} : vector<4x256xf32> to vector<4x128xf32>
    %141 = vector.extract_strided_slice %139 {offsets = [0, 128], sizes = [4, 128], strides = [1, 1]} : vector<4x256xf32> to vector<4x128xf32>
    %142 = vector.shape_cast %2 : vector<4x1xi1> to vector<4x1xi1>
    %143 = vector.broadcast %142 : vector<4x1xi1> to vector<4x128xi1>
    %144 = arith.select %143, %140, %141 : vector<4x128xi1>, vector<4x128xf32>
    %145 = arith.addf %137, %144 : vector<4x128xf32>
    %146 = arith.negf %145 : vector<4x128xf32>
    %147 = math.exp %146 : vector<4x128xf32>
    %cst_33 = arith.constant 1.000000e+00 : f32
    %148 = vector.broadcast %cst_33 : f32 to vector<4x128xf32>
    %149 = arith.addf %148, %147 : vector<4x128xf32>
    %150 = arith.divf %148, %149 : vector<4x128xf32>
    %151 = vector.extract_strided_slice %150 {offsets = [0, 0], sizes = [4, 32], strides = [1, 1]} : vector<4x128xf32> to vector<4x32xf32>
    %152 = vector.extract_strided_slice %150 {offsets = [0, 32], sizes = [4, 32], strides = [1, 1]} : vector<4x128xf32> to vector<4x32xf32>
    %153 = vector.extract_strided_slice %150 {offsets = [0, 96], sizes = [4, 32], strides = [1, 1]} : vector<4x128xf32> to vector<4x32xf32>
    %154 = vector.extract_strided_slice %145 {offsets = [0, 64], sizes = [4, 32], strides = [1, 1]} : vector<4x128xf32> to vector<4x32xf32>
    %155 = math.tanh %154 : vector<4x32xf32>
    %156 = arith.mulf %152, %125 : vector<4x32xf32>
    %157 = arith.mulf %151, %155 : vector<4x32xf32>
    %158 = arith.addf %156, %157 : vector<4x32xf32>
    %159 = math.tanh %158 : vector<4x32xf32>
    %160 = arith.mulf %153, %159 : vector<4x32xf32>
    %161 = vector.extract_strided_slice %160 {offsets = [0, 0], sizes = [2, 32], strides = [1, 1]} : vector<4x32xf32> to vector<2x32xf32>
    %c32_34 = arith.constant 32 : index
    %c0_35 = arith.constant 0 : index
    %162 = vector.load %arg4[%c32_34, %c0_35] : memref<72x128xf32, #tpu.memory_space<vmem>>, vector<2x32xf32>
    tpu.vector_store %arg4[%c32_34, %c0_35], %161 {strides = array<i32>} : memref<72x128xf32, #tpu.memory_space<vmem>>, vector<2x32xf32>,
    %163 = vector.extract_strided_slice %160 {offsets = [0, 0], sizes = [2, 32], strides = [1, 1]} : vector<4x32xf32> to vector<2x32xf32>
    %c34 = arith.constant 34 : index
    %c64_36 = arith.constant 64 : index
    %164 = vector.load %arg4[%c34, %c64_36] : memref<72x128xf32, #tpu.memory_space<vmem>>, vector<2x32xf32>
    tpu.vector_store %arg4[%c34, %c64_36], %163 {strides = array<i32>} : memref<72x128xf32, #tpu.memory_space<vmem>>, vector<2x32xf32>,
    %165 = vector.extract_strided_slice %160 {offsets = [2, 0], sizes = [2, 32], strides = [1, 1]} : vector<4x32xf32> to vector<2x32xf32>
    %c32_37 = arith.constant 32 : index
    %c32_38 = arith.constant 32 : index
    %166 = vector.load %arg4[%c32_37, %c32_38] : memref<72x128xf32, #tpu.memory_space<vmem>>, vector<2x32xf32>
    tpu.vector_store %arg4[%c32_37, %c32_38], %165 {strides = array<i32>} : memref<72x128xf32, #tpu.memory_space<vmem>>, vector<2x32xf32>,
    %167 = vector.extract_strided_slice %160 {offsets = [2, 0], sizes = [2, 32], strides = [1, 1]} : vector<4x32xf32> to vector<2x32xf32>
    %c34_39 = arith.constant 34 : index
    %c96_40 = arith.constant 96 : index
    %168 = vector.load %arg4[%c34_39, %c96_40] : memref<72x128xf32, #tpu.memory_space<vmem>>, vector<2x32xf32>
    tpu.vector_store %arg4[%c34_39, %c96_40], %167 {strides = array<i32>} : memref<72x128xf32, #tpu.memory_space<vmem>>, vector<2x32xf32>,
    %169 = vector.extract_strided_slice %13 {offsets = [5, 0, 0], sizes = [1, 4, 128], strides = [1, 1, 1]} : vector<9x8x128xf32> to vector<1x4x128xf32>
    %170 = vector.shape_cast %169 : vector<1x4x128xf32> to vector<4x128xf32>
    %171 = arith.truncf %160 : vector<4x32xf32> to vector<4x32xbf16>
    %cst_41 = arith.constant dense<0.000000e+00> : vector<4x256xf32>
    %172 = tpu.matmul %171, %14, %cst_41 {dimension_numbers = #tpu.dot_dimension_numbers<[1], [0], [0], [1], [0, 0, 1, 1], [], []>} : vector<4x32xbf16>, vector<32x256xbf16>, vector<4x256xf32> -> vector<4x256xf32>
    %173 = vector.extract_strided_slice %172 {offsets = [0, 0], sizes = [4, 128], strides = [1, 1]} : vector<4x256xf32> to vector<4x128xf32>
    %174 = vector.extract_strided_slice %172 {offsets = [0, 128], sizes = [4, 128], strides = [1, 1]} : vector<4x256xf32> to vector<4x128xf32>
    %175 = vector.shape_cast %2 : vector<4x1xi1> to vector<4x1xi1>
    %176 = vector.broadcast %175 : vector<4x1xi1> to vector<4x128xi1>
    %177 = arith.select %176, %173, %174 : vector<4x128xi1>, vector<4x128xf32>
    %178 = arith.addf %170, %177 : vector<4x128xf32>
    %179 = arith.negf %178 : vector<4x128xf32>
    %180 = math.exp %179 : vector<4x128xf32>
    %cst_42 = arith.constant 1.000000e+00 : f32
    %181 = vector.broadcast %cst_42 : f32 to vector<4x128xf32>
    %182 = arith.addf %181, %180 : vector<4x128xf32>
    %183 = arith.divf %181, %182 : vector<4x128xf32>
    %184 = vector.extract_strided_slice %183 {offsets = [0, 0], sizes = [4, 32], strides = [1, 1]} : vector<4x128xf32> to vector<4x32xf32>
    %185 = vector.extract_strided_slice %183 {offsets = [0, 32], sizes = [4, 32], strides = [1, 1]} : vector<4x128xf32> to vector<4x32xf32>
    %186 = vector.extract_strided_slice %183 {offsets = [0, 96], sizes = [4, 32], strides = [1, 1]} : vector<4x128xf32> to vector<4x32xf32>
    %187 = vector.extract_strided_slice %178 {offsets = [0, 64], sizes = [4, 32], strides = [1, 1]} : vector<4x128xf32> to vector<4x32xf32>
    %188 = math.tanh %187 : vector<4x32xf32>
    %189 = arith.mulf %185, %158 : vector<4x32xf32>
    %190 = arith.mulf %184, %188 : vector<4x32xf32>
    %191 = arith.addf %189, %190 : vector<4x32xf32>
    %192 = math.tanh %191 : vector<4x32xf32>
    %193 = arith.mulf %186, %192 : vector<4x32xf32>
    %194 = vector.extract_strided_slice %193 {offsets = [0, 0], sizes = [2, 32], strides = [1, 1]} : vector<4x32xf32> to vector<2x32xf32>
    %c40_43 = arith.constant 40 : index
    %c0_44 = arith.constant 0 : index
    %195 = vector.load %arg4[%c40_43, %c0_44] : memref<72x128xf32, #tpu.memory_space<vmem>>, vector<2x32xf32>
    tpu.vector_store %arg4[%c40_43, %c0_44], %194 {strides = array<i32>} : memref<72x128xf32, #tpu.memory_space<vmem>>, vector<2x32xf32>,
    %196 = vector.extract_strided_slice %193 {offsets = [0, 0], sizes = [2, 32], strides = [1, 1]} : vector<4x32xf32> to vector<2x32xf32>
    %c26_45 = arith.constant 26 : index
    %c64_46 = arith.constant 64 : index
    %197 = vector.load %arg4[%c26_45, %c64_46] : memref<72x128xf32, #tpu.memory_space<vmem>>, vector<2x32xf32>
    tpu.vector_store %arg4[%c26_45, %c64_46], %196 {strides = array<i32>} : memref<72x128xf32, #tpu.memory_space<vmem>>, vector<2x32xf32>,
    %198 = vector.extract_strided_slice %193 {offsets = [2, 0], sizes = [2, 32], strides = [1, 1]} : vector<4x32xf32> to vector<2x32xf32>
    %c24_47 = arith.constant 24 : index
    %c32_48 = arith.constant 32 : index
    %199 = vector.load %arg4[%c24_47, %c32_48] : memref<72x128xf32, #tpu.memory_space<vmem>>, vector<2x32xf32>
    tpu.vector_store %arg4[%c24_47, %c32_48], %198 {strides = array<i32>} : memref<72x128xf32, #tpu.memory_space<vmem>>, vector<2x32xf32>,
    %200 = vector.extract_strided_slice %193 {offsets = [2, 0], sizes = [2, 32], strides = [1, 1]} : vector<4x32xf32> to vector<2x32xf32>
    %c42_49 = arith.constant 42 : index
    %c96_50 = arith.constant 96 : index
    %201 = vector.load %arg4[%c42_49, %c96_50] : memref<72x128xf32, #tpu.memory_space<vmem>>, vector<2x32xf32>
    tpu.vector_store %arg4[%c42_49, %c96_50], %200 {strides = array<i32>} : memref<72x128xf32, #tpu.memory_space<vmem>>, vector<2x32xf32>,
    %202 = vector.extract_strided_slice %13 {offsets = [6, 0, 0], sizes = [1, 4, 128], strides = [1, 1, 1]} : vector<9x8x128xf32> to vector<1x4x128xf32>
    %203 = vector.shape_cast %202 : vector<1x4x128xf32> to vector<4x128xf32>
    %204 = arith.truncf %193 : vector<4x32xf32> to vector<4x32xbf16>
    %cst_51 = arith.constant dense<0.000000e+00> : vector<4x256xf32>
    %205 = tpu.matmul %204, %14, %cst_51 {dimension_numbers = #tpu.dot_dimension_numbers<[1], [0], [0], [1], [0, 0, 1, 1], [], []>} : vector<4x32xbf16>, vector<32x256xbf16>, vector<4x256xf32> -> vector<4x256xf32>
    %206 = vector.extract_strided_slice %205 {offsets = [0, 0], sizes = [4, 128], strides = [1, 1]} : vector<4x256xf32> to vector<4x128xf32>
    %207 = vector.extract_strided_slice %205 {offsets = [0, 128], sizes = [4, 128], strides = [1, 1]} : vector<4x256xf32> to vector<4x128xf32>
    %208 = vector.shape_cast %2 : vector<4x1xi1> to vector<4x1xi1>
    %209 = vector.broadcast %208 : vector<4x1xi1> to vector<4x128xi1>
    %210 = arith.select %209, %206, %207 : vector<4x128xi1>, vector<4x128xf32>
    %211 = arith.addf %203, %210 : vector<4x128xf32>
    %212 = arith.negf %211 : vector<4x128xf32>
    %213 = math.exp %212 : vector<4x128xf32>
    %cst_52 = arith.constant 1.000000e+00 : f32
    %214 = vector.broadcast %cst_52 : f32 to vector<4x128xf32>
    %215 = arith.addf %214, %213 : vector<4x128xf32>
    %216 = arith.divf %214, %215 : vector<4x128xf32>
    %217 = vector.extract_strided_slice %216 {offsets = [0, 0], sizes = [4, 32], strides = [1, 1]} : vector<4x128xf32> to vector<4x32xf32>
    %218 = vector.extract_strided_slice %216 {offsets = [0, 32], sizes = [4, 32], strides = [1, 1]} : vector<4x128xf32> to vector<4x32xf32>
    %219 = vector.extract_strided_slice %216 {offsets = [0, 96], sizes = [4, 32], strides = [1, 1]} : vector<4x128xf32> to vector<4x32xf32>
    %220 = vector.extract_strided_slice %211 {offsets = [0, 64], sizes = [4, 32], strides = [1, 1]} : vector<4x128xf32> to vector<4x32xf32>
    %221 = math.tanh %220 : vector<4x32xf32>
    %222 = arith.mulf %218, %191 : vector<4x32xf32>
    %223 = arith.mulf %217, %221 : vector<4x32xf32>
    %224 = arith.addf %222, %223 : vector<4x32xf32>
    %225 = math.tanh %224 : vector<4x32xf32>
    %226 = arith.mulf %219, %225 : vector<4x32xf32>
    %227 = vector.extract_strided_slice %226 {offsets = [0, 0], sizes = [2, 32], strides = [1, 1]} : vector<4x32xf32> to vector<2x32xf32>
    %c48_53 = arith.constant 48 : index
    %c0_54 = arith.constant 0 : index
    %228 = vector.load %arg4[%c48_53, %c0_54] : memref<72x128xf32, #tpu.memory_space<vmem>>, vector<2x32xf32>
    tpu.vector_store %arg4[%c48_53, %c0_54], %227 {strides = array<i32>} : memref<72x128xf32, #tpu.memory_space<vmem>>, vector<2x32xf32>,
    %229 = vector.extract_strided_slice %226 {offsets = [0, 0], sizes = [2, 32], strides = [1, 1]} : vector<4x32xf32> to vector<2x32xf32>
    %c18_55 = arith.constant 18 : index
    %c64_56 = arith.constant 64 : index
    %230 = vector.load %arg4[%c18_55, %c64_56] : memref<72x128xf32, #tpu.memory_space<vmem>>, vector<2x32xf32>
    tpu.vector_store %arg4[%c18_55, %c64_56], %229 {strides = array<i32>} : memref<72x128xf32, #tpu.memory_space<vmem>>, vector<2x32xf32>,
    %231 = vector.extract_strided_slice %226 {offsets = [2, 0], sizes = [2, 32], strides = [1, 1]} : vector<4x32xf32> to vector<2x32xf32>
    %c16_57 = arith.constant 16 : index
    %c32_58 = arith.constant 32 : index
    %232 = vector.load %arg4[%c16_57, %c32_58] : memref<72x128xf32, #tpu.memory_space<vmem>>, vector<2x32xf32>
    tpu.vector_store %arg4[%c16_57, %c32_58], %231 {strides = array<i32>} : memref<72x128xf32, #tpu.memory_space<vmem>>, vector<2x32xf32>,
    %233 = vector.extract_strided_slice %226 {offsets = [2, 0], sizes = [2, 32], strides = [1, 1]} : vector<4x32xf32> to vector<2x32xf32>
    %c50_59 = arith.constant 50 : index
    %c96_60 = arith.constant 96 : index
    %234 = vector.load %arg4[%c50_59, %c96_60] : memref<72x128xf32, #tpu.memory_space<vmem>>, vector<2x32xf32>
    tpu.vector_store %arg4[%c50_59, %c96_60], %233 {strides = array<i32>} : memref<72x128xf32, #tpu.memory_space<vmem>>, vector<2x32xf32>,
    %235 = vector.extract_strided_slice %13 {offsets = [7, 0, 0], sizes = [1, 4, 128], strides = [1, 1, 1]} : vector<9x8x128xf32> to vector<1x4x128xf32>
    %236 = vector.shape_cast %235 : vector<1x4x128xf32> to vector<4x128xf32>
    %237 = arith.truncf %226 : vector<4x32xf32> to vector<4x32xbf16>
    %cst_61 = arith.constant dense<0.000000e+00> : vector<4x256xf32>
    %238 = tpu.matmul %237, %14, %cst_61 {dimension_numbers = #tpu.dot_dimension_numbers<[1], [0], [0], [1], [0, 0, 1, 1], [], []>} : vector<4x32xbf16>, vector<32x256xbf16>, vector<4x256xf32> -> vector<4x256xf32>
    %239 = vector.extract_strided_slice %238 {offsets = [0, 0], sizes = [4, 128], strides = [1, 1]} : vector<4x256xf32> to vector<4x128xf32>
    %240 = vector.extract_strided_slice %238 {offsets = [0, 128], sizes = [4, 128], strides = [1, 1]} : vector<4x256xf32> to vector<4x128xf32>
    %241 = vector.shape_cast %2 : vector<4x1xi1> to vector<4x1xi1>
    %242 = vector.broadcast %241 : vector<4x1xi1> to vector<4x128xi1>
    %243 = arith.select %242, %239, %240 : vector<4x128xi1>, vector<4x128xf32>
    %244 = arith.addf %236, %243 : vector<4x128xf32>
    %245 = arith.negf %244 : vector<4x128xf32>
    %246 = math.exp %245 : vector<4x128xf32>
    %cst_62 = arith.constant 1.000000e+00 : f32
    %247 = vector.broadcast %cst_62 : f32 to vector<4x128xf32>
    %248 = arith.addf %247, %246 : vector<4x128xf32>
    %249 = arith.divf %247, %248 : vector<4x128xf32>
    %250 = vector.extract_strided_slice %249 {offsets = [0, 0], sizes = [4, 32], strides = [1, 1]} : vector<4x128xf32> to vector<4x32xf32>
    %251 = vector.extract_strided_slice %249 {offsets = [0, 32], sizes = [4, 32], strides = [1, 1]} : vector<4x128xf32> to vector<4x32xf32>
    %252 = vector.extract_strided_slice %249 {offsets = [0, 96], sizes = [4, 32], strides = [1, 1]} : vector<4x128xf32> to vector<4x32xf32>
    %253 = vector.extract_strided_slice %244 {offsets = [0, 64], sizes = [4, 32], strides = [1, 1]} : vector<4x128xf32> to vector<4x32xf32>
    %254 = math.tanh %253 : vector<4x32xf32>
    %255 = arith.mulf %251, %224 : vector<4x32xf32>
    %256 = arith.mulf %250, %254 : vector<4x32xf32>
    %257 = arith.addf %255, %256 : vector<4x32xf32>
    %258 = math.tanh %257 : vector<4x32xf32>
    %259 = arith.mulf %252, %258 : vector<4x32xf32>
    %260 = vector.extract_strided_slice %259 {offsets = [0, 0], sizes = [2, 32], strides = [1, 1]} : vector<4x32xf32> to vector<2x32xf32>
    %c56_63 = arith.constant 56 : index
    %c0_64 = arith.constant 0 : index
    %261 = vector.load %arg4[%c56_63, %c0_64] : memref<72x128xf32, #tpu.memory_space<vmem>>, vector<2x32xf32>
    tpu.vector_store %arg4[%c56_63, %c0_64], %260 {strides = array<i32>} : memref<72x128xf32, #tpu.memory_space<vmem>>, vector<2x32xf32>,
    %262 = vector.extract_strided_slice %259 {offsets = [0, 0], sizes = [2, 32], strides = [1, 1]} : vector<4x32xf32> to vector<2x32xf32>
    %c10_65 = arith.constant 10 : index
    %c64_66 = arith.constant 64 : index
    %263 = vector.load %arg4[%c10_65, %c64_66] : memref<72x128xf32, #tpu.memory_space<vmem>>, vector<2x32xf32>
    tpu.vector_store %arg4[%c10_65, %c64_66], %262 {strides = array<i32>} : memref<72x128xf32, #tpu.memory_space<vmem>>, vector<2x32xf32>,
    %264 = vector.extract_strided_slice %259 {offsets = [2, 0], sizes = [2, 32], strides = [1, 1]} : vector<4x32xf32> to vector<2x32xf32>
    %c8_67 = arith.constant 8 : index
    %c32_68 = arith.constant 32 : index
    %265 = vector.load %arg4[%c8_67, %c32_68] : memref<72x128xf32, #tpu.memory_space<vmem>>, vector<2x32xf32>
    tpu.vector_store %arg4[%c8_67, %c32_68], %264 {strides = array<i32>} : memref<72x128xf32, #tpu.memory_space<vmem>>, vector<2x32xf32>,
    %266 = vector.extract_strided_slice %259 {offsets = [2, 0], sizes = [2, 32], strides = [1, 1]} : vector<4x32xf32> to vector<2x32xf32>
    %c58_69 = arith.constant 58 : index
    %c96_70 = arith.constant 96 : index
    %267 = vector.load %arg4[%c58_69, %c96_70] : memref<72x128xf32, #tpu.memory_space<vmem>>, vector<2x32xf32>
    tpu.vector_store %arg4[%c58_69, %c96_70], %266 {strides = array<i32>} : memref<72x128xf32, #tpu.memory_space<vmem>>, vector<2x32xf32>,
    %268 = vector.extract_strided_slice %13 {offsets = [8, 0, 0], sizes = [1, 4, 128], strides = [1, 1, 1]} : vector<9x8x128xf32> to vector<1x4x128xf32>
    %269 = vector.shape_cast %268 : vector<1x4x128xf32> to vector<4x128xf32>
    %270 = arith.truncf %259 : vector<4x32xf32> to vector<4x32xbf16>
    %cst_71 = arith.constant dense<0.000000e+00> : vector<4x256xf32>
    %271 = tpu.matmul %270, %14, %cst_71 {dimension_numbers = #tpu.dot_dimension_numbers<[1], [0], [0], [1], [0, 0, 1, 1], [], []>} : vector<4x32xbf16>, vector<32x256xbf16>, vector<4x256xf32> -> vector<4x256xf32>
    %272 = vector.extract_strided_slice %271 {offsets = [0, 0], sizes = [4, 128], strides = [1, 1]} : vector<4x256xf32> to vector<4x128xf32>
    %273 = vector.extract_strided_slice %271 {offsets = [0, 128], sizes = [4, 128], strides = [1, 1]} : vector<4x256xf32> to vector<4x128xf32>
    %274 = vector.shape_cast %2 : vector<4x1xi1> to vector<4x1xi1>
    %275 = vector.broadcast %274 : vector<4x1xi1> to vector<4x128xi1>
    %276 = arith.select %275, %272, %273 : vector<4x128xi1>, vector<4x128xf32>
    %277 = arith.addf %269, %276 : vector<4x128xf32>
    %278 = arith.negf %277 : vector<4x128xf32>
    %279 = math.exp %278 : vector<4x128xf32>
    %cst_72 = arith.constant 1.000000e+00 : f32
    %280 = vector.broadcast %cst_72 : f32 to vector<4x128xf32>
    %281 = arith.addf %280, %279 : vector<4x128xf32>
    %282 = arith.divf %280, %281 : vector<4x128xf32>
    %283 = vector.extract_strided_slice %282 {offsets = [0, 0], sizes = [4, 32], strides = [1, 1]} : vector<4x128xf32> to vector<4x32xf32>
    %284 = vector.extract_strided_slice %282 {offsets = [0, 32], sizes = [4, 32], strides = [1, 1]} : vector<4x128xf32> to vector<4x32xf32>
    %285 = vector.extract_strided_slice %282 {offsets = [0, 96], sizes = [4, 32], strides = [1, 1]} : vector<4x128xf32> to vector<4x32xf32>
    %286 = vector.extract_strided_slice %277 {offsets = [0, 64], sizes = [4, 32], strides = [1, 1]} : vector<4x128xf32> to vector<4x32xf32>
    %287 = math.tanh %286 : vector<4x32xf32>
    %288 = arith.mulf %284, %257 : vector<4x32xf32>
    %289 = arith.mulf %283, %287 : vector<4x32xf32>
    %290 = arith.addf %288, %289 : vector<4x32xf32>
    %291 = math.tanh %290 : vector<4x32xf32>
    %292 = arith.mulf %285, %291 : vector<4x32xf32>
    %293 = vector.extract_strided_slice %292 {offsets = [0, 0], sizes = [2, 32], strides = [1, 1]} : vector<4x32xf32> to vector<2x32xf32>
    %c64_73 = arith.constant 64 : index
    %c0_74 = arith.constant 0 : index
    %294 = vector.load %arg4[%c64_73, %c0_74] : memref<72x128xf32, #tpu.memory_space<vmem>>, vector<2x32xf32>
    tpu.vector_store %arg4[%c64_73, %c0_74], %293 {strides = array<i32>} : memref<72x128xf32, #tpu.memory_space<vmem>>, vector<2x32xf32>,
    %295 = vector.extract_strided_slice %292 {offsets = [0, 0], sizes = [2, 32], strides = [1, 1]} : vector<4x32xf32> to vector<2x32xf32>
    %c2_75 = arith.constant 2 : index
    %c64_76 = arith.constant 64 : index
    %296 = vector.load %arg4[%c2_75, %c64_76] : memref<72x128xf32, #tpu.memory_space<vmem>>, vector<2x32xf32>
    tpu.vector_store %arg4[%c2_75, %c64_76], %295 {strides = array<i32>} : memref<72x128xf32, #tpu.memory_space<vmem>>, vector<2x32xf32>,
    %297 = vector.extract_strided_slice %292 {offsets = [2, 0], sizes = [2, 32], strides = [1, 1]} : vector<4x32xf32> to vector<2x32xf32>
    %c0_77 = arith.constant 0 : index
    %c32_78 = arith.constant 32 : index
    %298 = vector.load %arg4[%c0_77, %c32_78] : memref<72x128xf32, #tpu.memory_space<vmem>>, vector<2x32xf32>
    tpu.vector_store %arg4[%c0_77, %c32_78], %297 {strides = array<i32>} : memref<72x128xf32, #tpu.memory_space<vmem>>, vector<2x32xf32>,
    %299 = vector.extract_strided_slice %292 {offsets = [2, 0], sizes = [2, 32], strides = [1, 1]} : vector<4x32xf32> to vector<2x32xf32>
    %c66_79 = arith.constant 66 : index
    %c96_80 = arith.constant 96 : index
    %300 = vector.load %arg4[%c66_79, %c96_80] : memref<72x128xf32, #tpu.memory_space<vmem>>, vector<2x32xf32>
    tpu.vector_store %arg4[%c66_79, %c96_80], %299 {strides = array<i32>} : memref<72x128xf32, #tpu.memory_space<vmem>>, vector<2x32xf32>,
    %c8_81 = arith.constant 8 : index
    %c0_82 = arith.constant 0 : index
    %301 = vector.load %arg1[%c8_81, %c0_82] : memref<232x128xf32, #tpu.memory_space<vmem>>, vector<128x128xf32>
    %c144 = arith.constant 144 : index
    %c0_83 = arith.constant 0 : index
    %302 = vector.load %arg1[%c144, %c0_83] : memref<232x128xf32, #tpu.memory_space<vmem>>, vector<8x128xf32>
    %c0_84 = arith.constant 0 : index
    %c0_85 = arith.constant 0 : index
    %303 = vector.load %arg4[%c0_84, %c0_85] : memref<72x128xf32, #tpu.memory_space<vmem>>, vector<72x128xf32>
    %cst_86 = arith.constant dense<0.000000e+00> : vector<72x128xf32>
    %304 = tpu.matmul %303, %301, %cst_86 {dimension_numbers = #tpu.dot_dimension_numbers<[1], [0], [0], [1], [0, 0, 1, 1], [], []>} : vector<72x128xf32>, vector<128x128xf32>, vector<72x128xf32> -> vector<72x128xf32>
    %305 = vector.shape_cast %304 : vector<72x128xf32> to vector<9x8x128xf32>
    %306 = vector.shape_cast %302 : vector<8x128xf32> to vector<1x8x128xf32>
    %307 = vector.broadcast %306 : vector<1x8x128xf32> to vector<9x8x128xf32>
    %308 = arith.addf %305, %307 : vector<9x8x128xf32>
    %c32_87 = arith.constant 32 : index
    %c0_88 = arith.constant 0 : index
    %309 = vector.load %arg2[%c32_87, %c0_88] : memref<64x256xbf16, #tpu.memory_space<vmem>>, vector<32x256xbf16>
    %310 = vector.extract_strided_slice %308 {offsets = [0, 0, 0], sizes = [1, 4, 128], strides = [1, 1, 1]} : vector<9x8x128xf32> to vector<1x4x128xf32>
    %311 = vector.shape_cast %310 : vector<1x4x128xf32> to vector<4x128xf32>
    %312 = arith.negf %311 : vector<4x128xf32>
    %313 = math.exp %312 : vector<4x128xf32>
    %cst_89 = arith.constant 1.000000e+00 : f32
    %314 = vector.broadcast %cst_89 : f32 to vector<4x128xf32>
    %315 = arith.addf %314, %313 : vector<4x128xf32>
    %316 = arith.divf %314, %315 : vector<4x128xf32>
    %317 = vector.extract_strided_slice %316 {offsets = [0, 0], sizes = [4, 32], strides = [1, 1]} : vector<4x128xf32> to vector<4x32xf32>
    %318 = vector.extract_strided_slice %316 {offsets = [0, 96], sizes = [4, 32], strides = [1, 1]} : vector<4x128xf32> to vector<4x32xf32>
    %319 = vector.extract_strided_slice %311 {offsets = [0, 64], sizes = [4, 32], strides = [1, 1]} : vector<4x128xf32> to vector<4x32xf32>
    %320 = math.tanh %319 : vector<4x32xf32>
    %321 = arith.mulf %317, %320 : vector<4x32xf32>
    %322 = math.tanh %321 : vector<4x32xf32>
    %323 = arith.mulf %318, %322 : vector<4x32xf32>
    %c152 = arith.constant 152 : index
    %c0_90 = arith.constant 0 : index
    %324 = vector.load %arg1[%c152, %c0_90] : memref<232x128xf32, #tpu.memory_space<vmem>>, vector<4x32xf32>
    %325 = arith.mulf %323, %324 : vector<4x32xf32>
    %cst_91 = arith.constant dense<0.000000e+00> : vector<4xf32>
    %326 = vector.multi_reduction <add>, %325, %cst_91 [1] : vector<4x32xf32> to vector<4xf32>
    %327 = vector.shape_cast %326 : vector<4xf32> to vector<4x1xf32>
    %328 = arith.addf %5, %327 : vector<4x1xf32>
    %329 = vector.extract_strided_slice %308 {offsets = [1, 0, 0], sizes = [1, 4, 128], strides = [1, 1, 1]} : vector<9x8x128xf32> to vector<1x4x128xf32>
    %330 = vector.shape_cast %329 : vector<1x4x128xf32> to vector<4x128xf32>
    %331 = arith.truncf %323 : vector<4x32xf32> to vector<4x32xbf16>
    %cst_92 = arith.constant dense<0.000000e+00> : vector<4x256xf32>
    %332 = tpu.matmul %331, %309, %cst_92 {dimension_numbers = #tpu.dot_dimension_numbers<[1], [0], [0], [1], [0, 0, 1, 1], [], []>} : vector<4x32xbf16>, vector<32x256xbf16>, vector<4x256xf32> -> vector<4x256xf32>
    %333 = vector.extract_strided_slice %332 {offsets = [0, 0], sizes = [4, 128], strides = [1, 1]} : vector<4x256xf32> to vector<4x128xf32>
    %334 = vector.extract_strided_slice %332 {offsets = [0, 128], sizes = [4, 128], strides = [1, 1]} : vector<4x256xf32> to vector<4x128xf32>
    %335 = vector.shape_cast %2 : vector<4x1xi1> to vector<4x1xi1>
    %336 = vector.broadcast %335 : vector<4x1xi1> to vector<4x128xi1>
    %337 = arith.select %336, %333, %334 : vector<4x128xi1>, vector<4x128xf32>
    %338 = arith.addf %330, %337 : vector<4x128xf32>
    %339 = arith.negf %338 : vector<4x128xf32>
    %340 = math.exp %339 : vector<4x128xf32>
    %cst_93 = arith.constant 1.000000e+00 : f32
    %341 = vector.broadcast %cst_93 : f32 to vector<4x128xf32>
    %342 = arith.addf %341, %340 : vector<4x128xf32>
    %343 = arith.divf %341, %342 : vector<4x128xf32>
    %344 = vector.extract_strided_slice %343 {offsets = [0, 0], sizes = [4, 32], strides = [1, 1]} : vector<4x128xf32> to vector<4x32xf32>
    %345 = vector.extract_strided_slice %343 {offsets = [0, 32], sizes = [4, 32], strides = [1, 1]} : vector<4x128xf32> to vector<4x32xf32>
    %346 = vector.extract_strided_slice %343 {offsets = [0, 96], sizes = [4, 32], strides = [1, 1]} : vector<4x128xf32> to vector<4x32xf32>
    %347 = vector.extract_strided_slice %338 {offsets = [0, 64], sizes = [4, 32], strides = [1, 1]} : vector<4x128xf32> to vector<4x32xf32>
    %348 = math.tanh %347 : vector<4x32xf32>
    %349 = arith.mulf %345, %321 : vector<4x32xf32>
    %350 = arith.mulf %344, %348 : vector<4x32xf32>
    %351 = arith.addf %349, %350 : vector<4x32xf32>
    %352 = math.tanh %351 : vector<4x32xf32>
    %353 = arith.mulf %346, %352 : vector<4x32xf32>
    %c160 = arith.constant 160 : index
    %c0_94 = arith.constant 0 : index
    %354 = vector.load %arg1[%c160, %c0_94] : memref<232x128xf32, #tpu.memory_space<vmem>>, vector<4x32xf32>
    %355 = arith.mulf %353, %354 : vector<4x32xf32>
    %cst_95 = arith.constant dense<0.000000e+00> : vector<4xf32>
    %356 = vector.multi_reduction <add>, %355, %cst_95 [1] : vector<4x32xf32> to vector<4xf32>
    %357 = vector.shape_cast %356 : vector<4xf32> to vector<4x1xf32>
    %358 = arith.addf %328, %357 : vector<4x1xf32>
    %359 = vector.extract_strided_slice %308 {offsets = [2, 0, 0], sizes = [1, 4, 128], strides = [1, 1, 1]} : vector<9x8x128xf32> to vector<1x4x128xf32>
    %360 = vector.shape_cast %359 : vector<1x4x128xf32> to vector<4x128xf32>
    %361 = arith.truncf %353 : vector<4x32xf32> to vector<4x32xbf16>
    %cst_96 = arith.constant dense<0.000000e+00> : vector<4x256xf32>
    %362 = tpu.matmul %361, %309, %cst_96 {dimension_numbers = #tpu.dot_dimension_numbers<[1], [0], [0], [1], [0, 0, 1, 1], [], []>} : vector<4x32xbf16>, vector<32x256xbf16>, vector<4x256xf32> -> vector<4x256xf32>
    %363 = vector.extract_strided_slice %362 {offsets = [0, 0], sizes = [4, 128], strides = [1, 1]} : vector<4x256xf32> to vector<4x128xf32>
    %364 = vector.extract_strided_slice %362 {offsets = [0, 128], sizes = [4, 128], strides = [1, 1]} : vector<4x256xf32> to vector<4x128xf32>
    %365 = vector.shape_cast %2 : vector<4x1xi1> to vector<4x1xi1>
    %366 = vector.broadcast %365 : vector<4x1xi1> to vector<4x128xi1>
    %367 = arith.select %366, %363, %364 : vector<4x128xi1>, vector<4x128xf32>
    %368 = arith.addf %360, %367 : vector<4x128xf32>
    %369 = arith.negf %368 : vector<4x128xf32>
    %370 = math.exp %369 : vector<4x128xf32>
    %cst_97 = arith.constant 1.000000e+00 : f32
    %371 = vector.broadcast %cst_97 : f32 to vector<4x128xf32>
    %372 = arith.addf %371, %370 : vector<4x128xf32>
    %373 = arith.divf %371, %372 : vector<4x128xf32>
    %374 = vector.extract_strided_slice %373 {offsets = [0, 0], sizes = [4, 32], strides = [1, 1]} : vector<4x128xf32> to vector<4x32xf32>
    %375 = vector.extract_strided_slice %373 {offsets = [0, 32], sizes = [4, 32], strides = [1, 1]} : vector<4x128xf32> to vector<4x32xf32>
    %376 = vector.extract_strided_slice %373 {offsets = [0, 96], sizes = [4, 32], strides = [1, 1]} : vector<4x128xf32> to vector<4x32xf32>
    %377 = vector.extract_strided_slice %368 {offsets = [0, 64], sizes = [4, 32], strides = [1, 1]} : vector<4x128xf32> to vector<4x32xf32>
    %378 = math.tanh %377 : vector<4x32xf32>
    %379 = arith.mulf %375, %351 : vector<4x32xf32>
    %380 = arith.mulf %374, %378 : vector<4x32xf32>
    %381 = arith.addf %379, %380 : vector<4x32xf32>
    %382 = math.tanh %381 : vector<4x32xf32>
    %383 = arith.mulf %376, %382 : vector<4x32xf32>
    %c168 = arith.constant 168 : index
    %c0_98 = arith.constant 0 : index
    %384 = vector.load %arg1[%c168, %c0_98] : memref<232x128xf32, #tpu.memory_space<vmem>>, vector<4x32xf32>
    %385 = arith.mulf %383, %384 : vector<4x32xf32>
    %cst_99 = arith.constant dense<0.000000e+00> : vector<4xf32>
    %386 = vector.multi_reduction <add>, %385, %cst_99 [1] : vector<4x32xf32> to vector<4xf32>
    %387 = vector.shape_cast %386 : vector<4xf32> to vector<4x1xf32>
    %388 = arith.addf %358, %387 : vector<4x1xf32>
    %389 = vector.extract_strided_slice %308 {offsets = [3, 0, 0], sizes = [1, 4, 128], strides = [1, 1, 1]} : vector<9x8x128xf32> to vector<1x4x128xf32>
    %390 = vector.shape_cast %389 : vector<1x4x128xf32> to vector<4x128xf32>
    %391 = arith.truncf %383 : vector<4x32xf32> to vector<4x32xbf16>
    %cst_100 = arith.constant dense<0.000000e+00> : vector<4x256xf32>
    %392 = tpu.matmul %391, %309, %cst_100 {dimension_numbers = #tpu.dot_dimension_numbers<[1], [0], [0], [1], [0, 0, 1, 1], [], []>} : vector<4x32xbf16>, vector<32x256xbf16>, vector<4x256xf32> -> vector<4x256xf32>
    %393 = vector.extract_strided_slice %392 {offsets = [0, 0], sizes = [4, 128], strides = [1, 1]} : vector<4x256xf32> to vector<4x128xf32>
    %394 = vector.extract_strided_slice %392 {offsets = [0, 128], sizes = [4, 128], strides = [1, 1]} : vector<4x256xf32> to vector<4x128xf32>
    %395 = vector.shape_cast %2 : vector<4x1xi1> to vector<4x1xi1>
    %396 = vector.broadcast %395 : vector<4x1xi1> to vector<4x128xi1>
    %397 = arith.select %396, %393, %394 : vector<4x128xi1>, vector<4x128xf32>
    %398 = arith.addf %390, %397 : vector<4x128xf32>
    %399 = arith.negf %398 : vector<4x128xf32>
    %400 = math.exp %399 : vector<4x128xf32>
    %cst_101 = arith.constant 1.000000e+00 : f32
    %401 = vector.broadcast %cst_101 : f32 to vector<4x128xf32>
    %402 = arith.addf %401, %400 : vector<4x128xf32>
    %403 = arith.divf %401, %402 : vector<4x128xf32>
    %404 = vector.extract_strided_slice %403 {offsets = [0, 0], sizes = [4, 32], strides = [1, 1]} : vector<4x128xf32> to vector<4x32xf32>
    %405 = vector.extract_strided_slice %403 {offsets = [0, 32], sizes = [4, 32], strides = [1, 1]} : vector<4x128xf32> to vector<4x32xf32>
    %406 = vector.extract_strided_slice %403 {offsets = [0, 96], sizes = [4, 32], strides = [1, 1]} : vector<4x128xf32> to vector<4x32xf32>
    %407 = vector.extract_strided_slice %398 {offsets = [0, 64], sizes = [4, 32], strides = [1, 1]} : vector<4x128xf32> to vector<4x32xf32>
    %408 = math.tanh %407 : vector<4x32xf32>
    %409 = arith.mulf %405, %381 : vector<4x32xf32>
    %410 = arith.mulf %404, %408 : vector<4x32xf32>
    %411 = arith.addf %409, %410 : vector<4x32xf32>
    %412 = math.tanh %411 : vector<4x32xf32>
    %413 = arith.mulf %406, %412 : vector<4x32xf32>
    %c176 = arith.constant 176 : index
    %c0_102 = arith.constant 0 : index
    %414 = vector.load %arg1[%c176, %c0_102] : memref<232x128xf32, #tpu.memory_space<vmem>>, vector<4x32xf32>
    %415 = arith.mulf %413, %414 : vector<4x32xf32>
    %cst_103 = arith.constant dense<0.000000e+00> : vector<4xf32>
    %416 = vector.multi_reduction <add>, %415, %cst_103 [1] : vector<4x32xf32> to vector<4xf32>
    %417 = vector.shape_cast %416 : vector<4xf32> to vector<4x1xf32>
    %418 = arith.addf %388, %417 : vector<4x1xf32>
    %419 = vector.extract_strided_slice %308 {offsets = [4, 0, 0], sizes = [1, 4, 128], strides = [1, 1, 1]} : vector<9x8x128xf32> to vector<1x4x128xf32>
    %420 = vector.shape_cast %419 : vector<1x4x128xf32> to vector<4x128xf32>
    %421 = arith.truncf %413 : vector<4x32xf32> to vector<4x32xbf16>
    %cst_104 = arith.constant dense<0.000000e+00> : vector<4x256xf32>
    %422 = tpu.matmul %421, %309, %cst_104 {dimension_numbers = #tpu.dot_dimension_numbers<[1], [0], [0], [1], [0, 0, 1, 1], [], []>} : vector<4x32xbf16>, vector<32x256xbf16>, vector<4x256xf32> -> vector<4x256xf32>
    %423 = vector.extract_strided_slice %422 {offsets = [0, 0], sizes = [4, 128], strides = [1, 1]} : vector<4x256xf32> to vector<4x128xf32>
    %424 = vector.extract_strided_slice %422 {offsets = [0, 128], sizes = [4, 128], strides = [1, 1]} : vector<4x256xf32> to vector<4x128xf32>
    %425 = vector.shape_cast %2 : vector<4x1xi1> to vector<4x1xi1>
    %426 = vector.broadcast %425 : vector<4x1xi1> to vector<4x128xi1>
    %427 = arith.select %426, %423, %424 : vector<4x128xi1>, vector<4x128xf32>
    %428 = arith.addf %420, %427 : vector<4x128xf32>
    %429 = arith.negf %428 : vector<4x128xf32>
    %430 = math.exp %429 : vector<4x128xf32>
    %cst_105 = arith.constant 1.000000e+00 : f32
    %431 = vector.broadcast %cst_105 : f32 to vector<4x128xf32>
    %432 = arith.addf %431, %430 : vector<4x128xf32>
    %433 = arith.divf %431, %432 : vector<4x128xf32>
    %434 = vector.extract_strided_slice %433 {offsets = [0, 0], sizes = [4, 32], strides = [1, 1]} : vector<4x128xf32> to vector<4x32xf32>
    %435 = vector.extract_strided_slice %433 {offsets = [0, 32], sizes = [4, 32], strides = [1, 1]} : vector<4x128xf32> to vector<4x32xf32>
    %436 = vector.extract_strided_slice %433 {offsets = [0, 96], sizes = [4, 32], strides = [1, 1]} : vector<4x128xf32> to vector<4x32xf32>
    %437 = vector.extract_strided_slice %428 {offsets = [0, 64], sizes = [4, 32], strides = [1, 1]} : vector<4x128xf32> to vector<4x32xf32>
    %438 = math.tanh %437 : vector<4x32xf32>
    %439 = arith.mulf %435, %411 : vector<4x32xf32>
    %440 = arith.mulf %434, %438 : vector<4x32xf32>
    %441 = arith.addf %439, %440 : vector<4x32xf32>
    %442 = math.tanh %441 : vector<4x32xf32>
    %443 = arith.mulf %436, %442 : vector<4x32xf32>
    %c184 = arith.constant 184 : index
    %c0_106 = arith.constant 0 : index
    %444 = vector.load %arg1[%c184, %c0_106] : memref<232x128xf32, #tpu.memory_space<vmem>>, vector<4x32xf32>
    %445 = arith.mulf %443, %444 : vector<4x32xf32>
    %cst_107 = arith.constant dense<0.000000e+00> : vector<4xf32>
    %446 = vector.multi_reduction <add>, %445, %cst_107 [1] : vector<4x32xf32> to vector<4xf32>
    %447 = vector.shape_cast %446 : vector<4xf32> to vector<4x1xf32>
    %448 = arith.addf %418, %447 : vector<4x1xf32>
    %449 = vector.extract_strided_slice %308 {offsets = [5, 0, 0], sizes = [1, 4, 128], strides = [1, 1, 1]} : vector<9x8x128xf32> to vector<1x4x128xf32>
    %450 = vector.shape_cast %449 : vector<1x4x128xf32> to vector<4x128xf32>
    %451 = arith.truncf %443 : vector<4x32xf32> to vector<4x32xbf16>
    %cst_108 = arith.constant dense<0.000000e+00> : vector<4x256xf32>
    %452 = tpu.matmul %451, %309, %cst_108 {dimension_numbers = #tpu.dot_dimension_numbers<[1], [0], [0], [1], [0, 0, 1, 1], [], []>} : vector<4x32xbf16>, vector<32x256xbf16>, vector<4x256xf32> -> vector<4x256xf32>
    %453 = vector.extract_strided_slice %452 {offsets = [0, 0], sizes = [4, 128], strides = [1, 1]} : vector<4x256xf32> to vector<4x128xf32>
    %454 = vector.extract_strided_slice %452 {offsets = [0, 128], sizes = [4, 128], strides = [1, 1]} : vector<4x256xf32> to vector<4x128xf32>
    %455 = vector.shape_cast %2 : vector<4x1xi1> to vector<4x1xi1>
    %456 = vector.broadcast %455 : vector<4x1xi1> to vector<4x128xi1>
    %457 = arith.select %456, %453, %454 : vector<4x128xi1>, vector<4x128xf32>
    %458 = arith.addf %450, %457 : vector<4x128xf32>
    %459 = arith.negf %458 : vector<4x128xf32>
    %460 = math.exp %459 : vector<4x128xf32>
    %cst_109 = arith.constant 1.000000e+00 : f32
    %461 = vector.broadcast %cst_109 : f32 to vector<4x128xf32>
    %462 = arith.addf %461, %460 : vector<4x128xf32>
    %463 = arith.divf %461, %462 : vector<4x128xf32>
    %464 = vector.extract_strided_slice %463 {offsets = [0, 0], sizes = [4, 32], strides = [1, 1]} : vector<4x128xf32> to vector<4x32xf32>
    %465 = vector.extract_strided_slice %463 {offsets = [0, 32], sizes = [4, 32], strides = [1, 1]} : vector<4x128xf32> to vector<4x32xf32>
    %466 = vector.extract_strided_slice %463 {offsets = [0, 96], sizes = [4, 32], strides = [1, 1]} : vector<4x128xf32> to vector<4x32xf32>
    %467 = vector.extract_strided_slice %458 {offsets = [0, 64], sizes = [4, 32], strides = [1, 1]} : vector<4x128xf32> to vector<4x32xf32>
    %468 = math.tanh %467 : vector<4x32xf32>
    %469 = arith.mulf %465, %441 : vector<4x32xf32>
    %470 = arith.mulf %464, %468 : vector<4x32xf32>
    %471 = arith.addf %469, %470 : vector<4x32xf32>
    %472 = math.tanh %471 : vector<4x32xf32>
    %473 = arith.mulf %466, %472 : vector<4x32xf32>
    %c192 = arith.constant 192 : index
    %c0_110 = arith.constant 0 : index
    %474 = vector.load %arg1[%c192, %c0_110] : memref<232x128xf32, #tpu.memory_space<vmem>>, vector<4x32xf32>
    %475 = arith.mulf %473, %474 : vector<4x32xf32>
    %cst_111 = arith.constant dense<0.000000e+00> : vector<4xf32>
    %476 = vector.multi_reduction <add>, %475, %cst_111 [1] : vector<4x32xf32> to vector<4xf32>
    %477 = vector.shape_cast %476 : vector<4xf32> to vector<4x1xf32>
    %478 = arith.addf %448, %477 : vector<4x1xf32>
    %479 = vector.extract_strided_slice %308 {offsets = [6, 0, 0], sizes = [1, 4, 128], strides = [1, 1, 1]} : vector<9x8x128xf32> to vector<1x4x128xf32>
    %480 = vector.shape_cast %479 : vector<1x4x128xf32> to vector<4x128xf32>
    %481 = arith.truncf %473 : vector<4x32xf32> to vector<4x32xbf16>
    %cst_112 = arith.constant dense<0.000000e+00> : vector<4x256xf32>
    %482 = tpu.matmul %481, %309, %cst_112 {dimension_numbers = #tpu.dot_dimension_numbers<[1], [0], [0], [1], [0, 0, 1, 1], [], []>} : vector<4x32xbf16>, vector<32x256xbf16>, vector<4x256xf32> -> vector<4x256xf32>
    %483 = vector.extract_strided_slice %482 {offsets = [0, 0], sizes = [4, 128], strides = [1, 1]} : vector<4x256xf32> to vector<4x128xf32>
    %484 = vector.extract_strided_slice %482 {offsets = [0, 128], sizes = [4, 128], strides = [1, 1]} : vector<4x256xf32> to vector<4x128xf32>
    %485 = vector.shape_cast %2 : vector<4x1xi1> to vector<4x1xi1>
    %486 = vector.broadcast %485 : vector<4x1xi1> to vector<4x128xi1>
    %487 = arith.select %486, %483, %484 : vector<4x128xi1>, vector<4x128xf32>
    %488 = arith.addf %480, %487 : vector<4x128xf32>
    %489 = arith.negf %488 : vector<4x128xf32>
    %490 = math.exp %489 : vector<4x128xf32>
    %cst_113 = arith.constant 1.000000e+00 : f32
    %491 = vector.broadcast %cst_113 : f32 to vector<4x128xf32>
    %492 = arith.addf %491, %490 : vector<4x128xf32>
    %493 = arith.divf %491, %492 : vector<4x128xf32>
    %494 = vector.extract_strided_slice %493 {offsets = [0, 0], sizes = [4, 32], strides = [1, 1]} : vector<4x128xf32> to vector<4x32xf32>
    %495 = vector.extract_strided_slice %493 {offsets = [0, 32], sizes = [4, 32], strides = [1, 1]} : vector<4x128xf32> to vector<4x32xf32>
    %496 = vector.extract_strided_slice %493 {offsets = [0, 96], sizes = [4, 32], strides = [1, 1]} : vector<4x128xf32> to vector<4x32xf32>
    %497 = vector.extract_strided_slice %488 {offsets = [0, 64], sizes = [4, 32], strides = [1, 1]} : vector<4x128xf32> to vector<4x32xf32>
    %498 = math.tanh %497 : vector<4x32xf32>
    %499 = arith.mulf %495, %471 : vector<4x32xf32>
    %500 = arith.mulf %494, %498 : vector<4x32xf32>
    %501 = arith.addf %499, %500 : vector<4x32xf32>
    %502 = math.tanh %501 : vector<4x32xf32>
    %503 = arith.mulf %496, %502 : vector<4x32xf32>
    %c200 = arith.constant 200 : index
    %c0_114 = arith.constant 0 : index
    %504 = vector.load %arg1[%c200, %c0_114] : memref<232x128xf32, #tpu.memory_space<vmem>>, vector<4x32xf32>
    %505 = arith.mulf %503, %504 : vector<4x32xf32>
    %cst_115 = arith.constant dense<0.000000e+00> : vector<4xf32>
    %506 = vector.multi_reduction <add>, %505, %cst_115 [1] : vector<4x32xf32> to vector<4xf32>
    %507 = vector.shape_cast %506 : vector<4xf32> to vector<4x1xf32>
    %508 = arith.addf %478, %507 : vector<4x1xf32>
    %509 = vector.extract_strided_slice %308 {offsets = [7, 0, 0], sizes = [1, 4, 128], strides = [1, 1, 1]} : vector<9x8x128xf32> to vector<1x4x128xf32>
    %510 = vector.shape_cast %509 : vector<1x4x128xf32> to vector<4x128xf32>
    %511 = arith.truncf %503 : vector<4x32xf32> to vector<4x32xbf16>
    %cst_116 = arith.constant dense<0.000000e+00> : vector<4x256xf32>
    %512 = tpu.matmul %511, %309, %cst_116 {dimension_numbers = #tpu.dot_dimension_numbers<[1], [0], [0], [1], [0, 0, 1, 1], [], []>} : vector<4x32xbf16>, vector<32x256xbf16>, vector<4x256xf32> -> vector<4x256xf32>
    %513 = vector.extract_strided_slice %512 {offsets = [0, 0], sizes = [4, 128], strides = [1, 1]} : vector<4x256xf32> to vector<4x128xf32>
    %514 = vector.extract_strided_slice %512 {offsets = [0, 128], sizes = [4, 128], strides = [1, 1]} : vector<4x256xf32> to vector<4x128xf32>
    %515 = vector.shape_cast %2 : vector<4x1xi1> to vector<4x1xi1>
    %516 = vector.broadcast %515 : vector<4x1xi1> to vector<4x128xi1>
    %517 = arith.select %516, %513, %514 : vector<4x128xi1>, vector<4x128xf32>
    %518 = arith.addf %510, %517 : vector<4x128xf32>
    %519 = arith.negf %518 : vector<4x128xf32>
    %520 = math.exp %519 : vector<4x128xf32>
    %cst_117 = arith.constant 1.000000e+00 : f32
    %521 = vector.broadcast %cst_117 : f32 to vector<4x128xf32>
    %522 = arith.addf %521, %520 : vector<4x128xf32>
    %523 = arith.divf %521, %522 : vector<4x128xf32>
    %524 = vector.extract_strided_slice %523 {offsets = [0, 0], sizes = [4, 32], strides = [1, 1]} : vector<4x128xf32> to vector<4x32xf32>
    %525 = vector.extract_strided_slice %523 {offsets = [0, 32], sizes = [4, 32], strides = [1, 1]} : vector<4x128xf32> to vector<4x32xf32>
    %526 = vector.extract_strided_slice %523 {offsets = [0, 96], sizes = [4, 32], strides = [1, 1]} : vector<4x128xf32> to vector<4x32xf32>
    %527 = vector.extract_strided_slice %518 {offsets = [0, 64], sizes = [4, 32], strides = [1, 1]} : vector<4x128xf32> to vector<4x32xf32>
    %528 = math.tanh %527 : vector<4x32xf32>
    %529 = arith.mulf %525, %501 : vector<4x32xf32>
    %530 = arith.mulf %524, %528 : vector<4x32xf32>
    %531 = arith.addf %529, %530 : vector<4x32xf32>
    %532 = math.tanh %531 : vector<4x32xf32>
    %533 = arith.mulf %526, %532 : vector<4x32xf32>
    %c208 = arith.constant 208 : index
    %c0_118 = arith.constant 0 : index
    %534 = vector.load %arg1[%c208, %c0_118] : memref<232x128xf32, #tpu.memory_space<vmem>>, vector<4x32xf32>
    %535 = arith.mulf %533, %534 : vector<4x32xf32>
    %cst_119 = arith.constant dense<0.000000e+00> : vector<4xf32>
    %536 = vector.multi_reduction <add>, %535, %cst_119 [1] : vector<4x32xf32> to vector<4xf32>
    %537 = vector.shape_cast %536 : vector<4xf32> to vector<4x1xf32>
    %538 = arith.addf %508, %537 : vector<4x1xf32>
    %539 = vector.extract_strided_slice %308 {offsets = [8, 0, 0], sizes = [1, 4, 128], strides = [1, 1, 1]} : vector<9x8x128xf32> to vector<1x4x128xf32>
    %540 = vector.shape_cast %539 : vector<1x4x128xf32> to vector<4x128xf32>
    %541 = arith.truncf %533 : vector<4x32xf32> to vector<4x32xbf16>
    %cst_120 = arith.constant dense<0.000000e+00> : vector<4x256xf32>
    %542 = tpu.matmul %541, %309, %cst_120 {dimension_numbers = #tpu.dot_dimension_numbers<[1], [0], [0], [1], [0, 0, 1, 1], [], []>} : vector<4x32xbf16>, vector<32x256xbf16>, vector<4x256xf32> -> vector<4x256xf32>
    %543 = vector.extract_strided_slice %542 {offsets = [0, 0], sizes = [4, 128], strides = [1, 1]} : vector<4x256xf32> to vector<4x128xf32>
    %544 = vector.extract_strided_slice %542 {offsets = [0, 128], sizes = [4, 128], strides = [1, 1]} : vector<4x256xf32> to vector<4x128xf32>
    %545 = vector.shape_cast %2 : vector<4x1xi1> to vector<4x1xi1>
    %546 = vector.broadcast %545 : vector<4x1xi1> to vector<4x128xi1>
    %547 = arith.select %546, %543, %544 : vector<4x128xi1>, vector<4x128xf32>
    %548 = arith.addf %540, %547 : vector<4x128xf32>
    %549 = arith.negf %548 : vector<4x128xf32>
    %550 = math.exp %549 : vector<4x128xf32>
    %cst_121 = arith.constant 1.000000e+00 : f32
    %551 = vector.broadcast %cst_121 : f32 to vector<4x128xf32>
    %552 = arith.addf %551, %550 : vector<4x128xf32>
    %553 = arith.divf %551, %552 : vector<4x128xf32>
    %554 = vector.extract_strided_slice %553 {offsets = [0, 0], sizes = [4, 32], strides = [1, 1]} : vector<4x128xf32> to vector<4x32xf32>
    %555 = vector.extract_strided_slice %553 {offsets = [0, 32], sizes = [4, 32], strides = [1, 1]} : vector<4x128xf32> to vector<4x32xf32>
    %556 = vector.extract_strided_slice %553 {offsets = [0, 96], sizes = [4, 32], strides = [1, 1]} : vector<4x128xf32> to vector<4x32xf32>
    %557 = vector.extract_strided_slice %548 {offsets = [0, 64], sizes = [4, 32], strides = [1, 1]} : vector<4x128xf32> to vector<4x32xf32>
    %558 = math.tanh %557 : vector<4x32xf32>
    %559 = arith.mulf %555, %531 : vector<4x32xf32>
    %560 = arith.mulf %554, %558 : vector<4x32xf32>
    %561 = arith.addf %559, %560 : vector<4x32xf32>
    %562 = math.tanh %561 : vector<4x32xf32>
    %563 = arith.mulf %556, %562 : vector<4x32xf32>
    %c216 = arith.constant 216 : index
    %c0_122 = arith.constant 0 : index
    %564 = vector.load %arg1[%c216, %c0_122] : memref<232x128xf32, #tpu.memory_space<vmem>>, vector<4x32xf32>
    %565 = arith.mulf %563, %564 : vector<4x32xf32>
    %cst_123 = arith.constant dense<0.000000e+00> : vector<4xf32>
    %566 = vector.multi_reduction <add>, %565, %cst_123 [1] : vector<4x32xf32> to vector<4xf32>
    %567 = vector.shape_cast %566 : vector<4xf32> to vector<4x1xf32>
    %568 = arith.addf %538, %567 : vector<4x1xf32>
    %c224 = arith.constant 224 : index
    %c0_124 = arith.constant 0 : index
    %569 = vector.load %arg1[%c224, %c0_124] : memref<232x128xf32, #tpu.memory_space<vmem>>, vector<1x1xf32>
    %570 = vector.extract_strided_slice %568 {offsets = [0, 0], sizes = [2, 1], strides = [1, 1]} : vector<4x1xf32> to vector<2x1xf32>
    %571 = vector.extract_strided_slice %568 {offsets = [2, 0], sizes = [2, 1], strides = [1, 1]} : vector<4x1xf32> to vector<2x1xf32>
    %572 = arith.addf %570, %571 : vector<2x1xf32>
    %573 = vector.broadcast %569 : vector<1x1xf32> to vector<2x1xf32>
    %574 = arith.addf %572, %573 : vector<2x1xf32>
    %c0_125 = arith.constant 0 : index
    %c0_126 = arith.constant 0 : index
    %575 = vector.load %arg3[%c0_125, %c0_126] : memref<2x1xf32, #tpu.memory_space<vmem>>, vector<2x1xf32>
    tpu.vector_store %arg3[%c0_125, %c0_126], %574 {strides = array<i32>} : memref<2x1xf32, #tpu.memory_space<vmem>>, vector<2x1xf32>,
    return
  }
}

</mosaic_0001>

<bundles_post_ra>
// kernel: lstm_model_pallas.1
= control target key start
LH: loop header
LB: loop body
LE: loop exit
PB: predicated region body
PF: predicated region fallthrough
CT: control target
= control target key end

     0   :  { %8 = vsyncpa [#allocation4], 0  ;;  %s2260_s12 = smov [#allocation3]   ;;  %s2873_s0 = inlined_call_operand.vmem [shape: f32[72,8], index: 0, kind: input, shape index: {}]   ;;  %s2874_s1 = inlined_call_operand.hbm [shape: f32[232,128], index: 1, kind: input, shape index: {}]   ;;  %s2875_s2 = inlined_call_operand.vmem [shape: bf16[64,256], index: 2, kind: input, shape index: {}]   ;;  %s2876_s3 = inlined_call_operand.vmem [shape: f32[2,1], index: 3, kind: output, shape index: {}]  }
   0x1   :  { %s16_s13 = sshll.u32 %s2260_s12, 4  ;;  %s17_s13 = int_to_ptr.vmem [resolvable:$true] %s16_s13 }
   0x2   :  { %s2246_s14 = scalar_lea.vmem %s17_s13, 3712  ;;  %p2251_p1 = scmp.lt.s32.totalorder %s17_s13, %s17_s13 }
   0x3   :  { %p2247_p0 = scmp.ne.s32.totalorder %s17_s13, %s2246_s14  ;;  %p2252_p2 = scmp.lt.s32.totalorder %s2246_s14, %s2246_s14 }
   0x5   :  { %p2253_p3 = por %p2252_p2, %p2251_p1 }
   0x7   :  { %p2254_p4 = pnand %p2253_p3, %p2247_p0 }
   0x9   :  { %2257 = shalt.err (!%p2254_p4)
}
   0xa   :  { %s2261_s15 = smov 128   ;;  %s2262_s16 = smov 8  }
   0xb   :  { %22 = dma.hbm_to_vmem [thread:$0]  %s2874_s1, 3712, %s17_s13, [#allocation4], %s2261_s15, %s2261_s15, %s2262_s16  }
   0xc   :  { %2258 = dma.done.wait [#allocation4], 3712  }
   0xd   :  { %2259 = vsyncadd [#allocation4], 4294963584  ;;  %v2263_v0 = vmov 0.0   ;;  %vm2264_vm0 = vmmov 0   ;;  %vm52_vm1 = vcmask 64512   ;;  %v41_v1 = vld [vmem:[#allocation3] sm:$0xff]  ;;  %v29_v27 = vlaneseq }
   0xe   :  { %1984 = vmatprep.subr.mxu0 %v2263_v0  ;;  %32 = vst [vmem:[#allocation2] sm:$0xff] %v2263_v0  ;;  %33 = vst [vmem:[#allocation2 + $0x8] sm:$0xff] %v2263_v0  ;;  %1986 = vmatprep.mubr.msk.f32.mxu0 %vm2264_vm0, %v2263_v0  ;;  %v43_v2 = vld [vmem:[%s2873_s0] sm:$0xff]  ;;  %v2310_v3 = vld [vmem:[#allocation3 + $0x88] sm:$0xff]  ;;  %s2265_s20 = smov 64   ;;  %v2266_v19 = vmov 0  }
   0xf   :  { %34 = vst [vmem:[#allocation2 + $0x10] sm:$0xff] %v2263_v0  ;;  %35 = vst [vmem:[#allocation2 + $0x18] sm:$0xff] %v2263_v0  ;;  %1985 = vmatpush3.msra.mxu0 %v41_v1  ;;  %v2317_v14 = vld [vmem:[%s2875_s2 + $0x14] ss:$8 sps:$4 sm:$0xff]   ;;  %v2322_v15 = vld [vmem:[%s2875_s2 + $0x10] ss:$8 sps:$4 sm:$0xff]   ;;  %299 = vmatprep.mubr.bf16.mxu1 %v2266_v19 }
  0x10   :  { %36 = vst [vmem:[#allocation2 + $0x20] sm:$0xff] %v2263_v0  ;;  %37 = vst [vmem:[#allocation2 + $0x28] sm:$0xff] %v2263_v0  ;;  %1987 = vmatmul.mubr.msk.f32.vlgmr.msra.gmra.mxu0 %vm52_vm1, %v43_v2  ;;  %v2327_v16 = vld [vmem:[%s2875_s2 + $0x4] ss:$8 sps:$4 sm:$0xff]   ;;  %279 = vmatprep.subr.bf16.mxu1 %v2317_v14  ;;  %v2338_v18 = vld [vmem:[%s2875_s2] ss:$8 sps:$4 sm:$0xff]  }
  0x11   :  { %38 = vst [vmem:[#allocation2 + $0x30] sm:$0xff] %v2263_v0  ;;  %39 = vst [vmem:[#allocation2 + $0x38] sm:$0xff] %v2263_v0  ;;  %1989 = vmatprep.mubr.msk.f32.mxu0 %vm2264_vm0, %v2263_v0  ;;  %v44_v17 = vld [vmem:[%s2873_s0 + $0x8] sm:$0xff]  ;;  %280 = vmatpush1.bf16.msra.mxu1 %v2322_v15  ;;  %s2267_s4 = smov 96   ;;  %s2268_s5 = smov 32   ;;  %vm237_vm2 = vcmask 1044226  }
  0x12   :  { %40 = vst [vmem:[#allocation2 + $0x40] sm:$0xff] %v2263_v0  ;;  %281 = vmatprep.subr.bf16.mxu1 %v2327_v16  ;;  %637 = vmatprep.subr.bf16.mxu0 %v2317_v14  ;;  %vm263_vm3 = vcmask 261120   ;;  %v2366_v28 = vshrl.u32 %v29_v27, 7  ;;  %v45_v47 = vld [vmem:[%s2873_s0 + $0x10] sm:$0xff]  ;;  %vm225_vm5 = vcmask 254976   ;;  %vm235_vm6 = vcmask 519426  }
  0x13   :  { %638 = vmatpush1.bf16.msra.mxu0 %v2322_v15  ;;  %vm230_vm7 = vcmask 779776   ;;  %vm1147_vm8 = vcmask 257024   ;;  %vm1890_vm9 = vcmask 1024  }
  0x14   :  { %1990 = vmatmul.mubr.msk.f32.gmra.mxu0 %vm52_vm1, %v44_v17  ;;  %639 = vmatprep.subr.bf16.mxu0 %v2327_v16  ;;  %vm31_vm4 = vcmp.lt.s32.totalorder %v2366_v28, 2 }
  0x15   :  { %1992 = vmatprep.mubr.msk.f32.mxu0 %vm2264_vm0, %v2263_v0  ;;  %282 = vmatpush1.bf16.msra.mxu1 %v2338_v18 }
  0x16   :  { %373 = vmatprep.subr.bf16.mxu1 %v2317_v14 }
  0x17   :  { %640 = vmatpush1.bf16.msra.mxu0 %v2338_v18 }
  0x18   :  { %813 = vmatprep.subr.bf16.mxu0 %v2317_v14  ;;  %1993 = vmatmul.mubr.msk.f32.gmra.mxu0 %vm52_vm1, %v45_v47 }
  0x19   :  { %1995 = vmatprep.mubr.msk.f32.mxu0 %vm2264_vm0, %v2263_v0 }
  0xd0   :  { %v146_v4 = vpop.f32.mrf.mxu0 }
  0xd1   :  { %v190_v5 = vadd.f32 %v146_v4, %v2310_v3 }
  0xd2   :  { %v1988_v6 = vpop.f32.mrf.mxu0 }
  0xd3   :  { %2093 = vtanh.f32 %v190_v5  ;;  %v1906_v8 = vmul.f32 -1.442695, %v190_v5 }
  0xd4   :  { %v151_v24 = vpop.f32.mrf.mxu0 }
  0xd5   :  { %2095 = vpow2.f32 %v1906_v8  ;;  %v191_v29 = vadd.f32 %v151_v24, %v2310_v3 }
  0xd6   :  { %v1991_v25 = vpop.f32.mrf.mxu0 }
  0xd8   :  { %v156_v52 = vpop.f32.mrf.mxu0 }
  0xd9   :  { %v192_v55 = vadd.f32 %v156_v52, %v2310_v3 }
  0xda   :  { %v1994_v53 = vpop.f32.mrf.mxu0 }
  0xe0   :  { %v2094_v7 = vpop.eup %2093 }
  0xe1   :  { %211 = vrot.lane.b32.xlu0 %v2094_v7, %s2265_s20 }
  0xe2   :  { %v2096_v9 = vpop.eup %2095 }
  0xe3   :  { %v206_v10 = vadd.f32 1.0, %v2096_v9 }
  0xe5   :  { %2097 = vrcp.f32 %v206_v10  ;;  %v46_v10 = vld [vmem:[%s2873_s0 + $0x18] sm:$0xff] }
  0xe6   :  { %1996 = vmatmul.mubr.msk.f32.gmra.mxu0 %vm52_vm1, %v46_v10 }
  0xe7   :  { %1998 = vmatprep.mubr.msk.f32.mxu0 %vm2264_vm0, %v2263_v0 }
  0xf2   :  { %v2098_v11 = vpop.eup %2097 }
 0x153   :  { %v212_v12 = vpop.permute.xlu0 %211 }
 0x154   :  { %v214_v13 = vmul.f32 %v2098_v11, %v212_v12 }
 0x156   :  { %2099 = vtanh.f32 %v214_v13 }
 0x163   :  { %v2100_v20 = vpop.eup %2099 }
 0x164   :  { %217 = vrot.lane.b32.xlu0 %v2100_v20, %s2267_s4 }
 0x168   :  { %320 = vrot.lane.b32.xlu0 %v214_v13, %s2268_s5 }
 0x1a6   :  { %v161_v20 = vpop.f32.mrf.mxu0 }
 0x1a7   :  { %v193_v24 = vadd.f32 %v161_v20, %v2310_v3 }
 0x1d6   :  { %v218_v21 = vpop.permute.xlu0 %217 }
 0x1d7   :  { %v2353_v22 = vmul.f32 %v2098_v11, %v218_v21  ;;  %v1997_v21 = vpop.f32.mrf.mxu0 }
 0x1d9   :  { %v239_v23 = vpack.c.bf16 %v2353_v22, %v2353_v22  ;;  %238 = vst.msk [vmem:[#allocation2] sm:$0xc] %vm237_vm2, %v2353_v22 }
 0x1da   :  { %v321_v43 = vpop.permute.xlu0 %320 }
 0x1db   :  { %241 = vrot.lane.b32.xlu1 %v239_v23, %s2268_s5 }
 0x24d   :  { %v242_v26 = vpop.permute.xlu1 %241 }
 0x24e   :  { %1911 = vmatmul.mubr.msk.bf16.vlgmr.msra.gmra.mxu1 %vm263_vm3, %v242_v26 }
 0x24f   :  { %374 = vmatpush1.bf16.msra.mxu1 %v2322_v15  ;;  %393 = vmatprep.mubr.bf16.mxu1 %v2266_v19 }
 0x250   :  { %375 = vmatprep.subr.bf16.mxu1 %v2327_v16 }
 0x253   :  { %376 = vmatpush1.bf16.msra.mxu1 %v2338_v18 }
 0x254   :  { %461 = vmatprep.subr.bf16.mxu1 %v2317_v14 }
 0x30e   :  { %v301_v30 = vpop.f32.mrf.mxu1 }
 0x310   :  { %v303_v31 = vpop.f32.mrf.mxu1 }
 0x311   :  { %v310_v32 = vsel %vm31_vm4, %v301_v30, %v303_v31 }
 0x312   :  { %v311_v33 = vadd.f32 %v310_v32, %v191_v29  ;;  %v305_v34 = vpop.f32.mrf.mxu1 }
 0x314   :  { %2101 = vtanh.f32 %v311_v33  ;;  %v306_v35 = vpop.f32.mrf.mxu1  ;;  %v1912_v37 = vmul.f32 -1.442695, %v311_v33 }
 0x316   :  { %2103 = vpow2.f32 %v1912_v37 }
 0x321   :  { %v2102_v36 = vpop.eup %2101 }
 0x322   :  { %325 = vrot.lane.b32.xlu1 %v2102_v36, %s2265_s20 }
 0x323   :  { %v2104_v38 = vpop.eup %2103 }
 0x324   :  { %v315_v39 = vadd.f32 1.0, %v2104_v38 }
 0x326   :  { %2105 = vrcp.f32 %v315_v39 }
 0x333   :  { %v2106_v40 = vpop.eup %2105 }
 0x334   :  { %v323_v44 = vmul.f32 %v2106_v40, %v321_v43 }
 0x394   :  { %v326_v41 = vpop.permute.xlu1 %325 }
 0x395   :  { %v328_v42 = vmul.f32 %v2106_v40, %v326_v41 }
 0x397   :  { %330 = vrot.lane.b32.xlu1 %v328_v42, %s2268_s5  ;;  %v47_v42 = vld [vmem:[%s2873_s0 + $0x20] sm:$0xff] }
 0x398   :  { %1999 = vmatmul.mubr.msk.f32.gmra.mxu0 %vm52_vm1, %v47_v42 }
 0x399   :  { %2001 = vmatprep.mubr.msk.f32.mxu0 %vm2264_vm0, %v2263_v0 }
 0x409   :  { %v331_v45 = vpop.permute.xlu1 %330 }
 0x40a   :  { %v333_v46 = vadd.f32 %v331_v45, %v323_v44 }
 0x40c   :  { %2107 = vtanh.f32 %v333_v46 }
 0x419   :  { %v2108_v48 = vpop.eup %2107 }
 0x41a   :  { %336 = vrot.lane.b32.xlu0 %v2108_v48, %s2265_s20 }
 0x458   :  { %v166_v47 = vpop.f32.mrf.mxu0 }
 0x45a   :  { %v2000_v48 = vpop.f32.mrf.mxu0 }
 0x48c   :  { %v337_v49 = vpop.permute.xlu0 %336 }
 0x48d   :  { %v2381_v50 = vmul.f32 %v2106_v40, %v337_v49 }
 0x48f   :  { %v354_v51 = vpack.c.bf16 %v2381_v50, %v2381_v50  ;;  %353 = vst.msk [vmem:[#allocation2 + $0x8] sm:$0xc] %vm237_vm2, %v2381_v50 }
 0x491   :  { %356 = vrot.lane.b32.xlu1 %v354_v51, %s2268_s5  ;;  %v194_v51 = vadd.f32 %v166_v47, %v2310_v3 }
 0x503   :  { %v357_v54 = vpop.permute.xlu1 %356 }
 0x504   :  { %1913 = vmatmul.mubr.msk.bf16.vlgmr.msra.gmra.mxu1 %vm263_vm3, %v357_v54 }
 0x505   :  { %462 = vmatpush1.bf16.msra.mxu1 %v2322_v15  ;;  %481 = vmatprep.mubr.bf16.mxu1 %v2266_v19 }
 0x506   :  { %463 = vmatprep.subr.bf16.mxu1 %v2327_v16 }
 0x509   :  { %464 = vmatpush1.bf16.msra.mxu1 %v2338_v18 }
 0x50a   :  { %549 = vmatprep.subr.bf16.mxu1 %v2317_v14 }
 0x5c4   :  { %v395_v56 = vpop.f32.mrf.mxu1 }
 0x5c6   :  { %v397_v57 = vpop.f32.mrf.mxu1 }
 0x5c7   :  { %v402_v58 = vsel %vm31_vm4, %v395_v56, %v397_v57 }
 0x5c8   :  { %v403_v59 = vadd.f32 %v402_v58, %v192_v55  ;;  %v399_v60 = vpop.f32.mrf.mxu1 }
 0x5ca   :  { %2109 = vtanh.f32 %v403_v59  ;;  %v400_v61 = vpop.f32.mrf.mxu1  ;;  %v1914_v63 = vmul.f32 -1.442695, %v403_v59 }
 0x5cc   :  { %2111 = vpow2.f32 %v1914_v63 }
 0x5d7   :  { %v2110_v62 = vpop.eup %2109 }
 0x5d8   :  { %413 = vrot.lane.b32.xlu0 %v2110_v62, %s2265_s20 }
 0x5d9   :  { %v2112_v1 = vpop.eup %2111 }
 0x5da   :  { %v407_v2 = vadd.f32 1.0, %v2112_v1 }
 0x5dc   :  { %2113 = vrcp.f32 %v407_v2 }
 0x5e9   :  { %v2114_v4 = vpop.eup %2113 }
 0x5ea   :  { %v411_v7 = vmul.f32 %v2114_v4, %v333_v46 }
 0x64a   :  { %v414_v5 = vpop.permute.xlu0 %413 }
 0x64b   :  { %v416_v6 = vmul.f32 %v2114_v4, %v414_v5  ;;  %v48_v5 = vld [vmem:[%s2873_s0 + $0x28] sm:$0xff] }
 0x64c   :  { %2002 = vmatmul.mubr.msk.f32.gmra.mxu0 %vm52_vm1, %v48_v5 }
 0x64d   :  { %418 = vrot.lane.b32.xlu1 %v416_v6, %s2268_s5  ;;  %2004 = vmatprep.mubr.msk.f32.mxu0 %vm2264_vm0, %v2263_v0  ;;  %v49_v6 = vld [vmem:[%s2873_s0 + $0x30] sm:$0xff] }
 0x650   :  { %2005 = vmatmul.mubr.msk.f32.gmra.mxu0 %vm52_vm1, %v49_v6 }
 0x651   :  { %2007 = vmatprep.mubr.msk.f32.mxu0 %vm2264_vm0, %v2263_v0 }
 0x6bf   :  { %v419_v8 = vpop.permute.xlu1 %418 }
 0x6c0   :  { %v421_v9 = vadd.f32 %v419_v8, %v411_v7  ;;  %v50_v7 = vld [vmem:[%s2873_s0 + $0x38] sm:$0xff] }
 0x6c1   :  { %2008 = vmatmul.mubr.msk.f32.gmra.mxu0 %vm52_vm1, %v50_v7 }
 0x6c2   :  { %2115 = vtanh.f32 %v421_v9  ;;  %2010 = vmatprep.mubr.msk.f32.mxu0 %vm2264_vm0, %v2263_v0 }
 0x6cf   :  { %v2116_v11 = vpop.eup %2115 }
 0x6d0   :  { %424 = vrot.lane.b32.xlu0 %v2116_v11, %s2265_s20 }
 0x742   :  { %v425_v12 = vpop.permute.xlu0 %424 }
 0x743   :  { %v2406_v13 = vmul.f32 %v2114_v4, %v425_v12 }
 0x745   :  { %v442_v17 = vpack.c.bf16 %v2406_v13, %v2406_v13  ;;  %441 = vst.msk [vmem:[#allocation2 + $0x10] sm:$0xc] %vm237_vm2, %v2406_v13 }
 0x747   :  { %444 = vrot.lane.b32.xlu1 %v442_v17, %s2268_s5  ;;  %v171_v17 = vpop.f32.mrf.mxu0 }
 0x749   :  { %v2003_v20 = vpop.f32.mrf.mxu0 }
 0x74b   :  { %v176_v21 = vpop.f32.mrf.mxu0 }
 0x7b9   :  { %v445_v23 = vpop.permute.xlu1 %444 }
 0x7ba   :  { %1915 = vmatmul.mubr.msk.bf16.vlgmr.msra.gmra.mxu1 %vm263_vm3, %v445_v23  ;;  %v2006_v23 = vpop.f32.mrf.mxu0 }
 0x7bb   :  { %550 = vmatpush1.bf16.msra.mxu1 %v2322_v15  ;;  %569 = vmatprep.mubr.bf16.mxu1 %v2266_v19 }
 0x7bc   :  { %551 = vmatprep.subr.bf16.mxu1 %v2327_v16 }
 0x7bf   :  { %552 = vmatpush1.bf16.msra.mxu1 %v2338_v18 }
 0x7c0   :  { %725 = vmatprep.subr.bf16.mxu1 %v2317_v14 }
 0x87a   :  { %v483_v25 = vpop.f32.mrf.mxu1 }
 0x87c   :  { %v485_v26 = vpop.f32.mrf.mxu1 }
 0x87d   :  { %v490_v27 = vsel %vm31_vm4, %v483_v25, %v485_v26 }
 0x87e   :  { %v491_v29 = vadd.f32 %v490_v27, %v193_v24  ;;  %v487_v30 = vpop.f32.mrf.mxu1  ;;  %v2478_v24 = vpop.f32.mrf.mxu0 }
 0x880   :  { %2117 = vtanh.f32 %v491_v29  ;;  %v488_v31 = vpop.f32.mrf.mxu1  ;;  %v1916_v33 = vmul.f32 -1.442695, %v491_v29  ;;  %v2009_v25 = vpop.f32.mrf.mxu0 }
 0x881   :  { %v195_v31 = vadd.f32 %v171_v17, %v2310_v3 }
 0x882   :  { %2119 = vpow2.f32 %v1916_v33 }
 0x88d   :  { %v2118_v32 = vpop.eup %2117 }
 0x88e   :  { %501 = vrot.lane.b32.xlu0 %v2118_v32, %s2265_s20 }
 0x88f   :  { %v2120_v34 = vpop.eup %2119 }
 0x890   :  { %v495_v35 = vadd.f32 1.0, %v2120_v34 }
 0x892   :  { %2121 = vrcp.f32 %v495_v35 }
 0x89f   :  { %v2122_v36 = vpop.eup %2121 }
 0x8a0   :  { %v499_v39 = vmul.f32 %v2122_v36, %v421_v9  ;;  %v51_v9 = vld [vmem:[%s2873_s0 + $0x40] sm:$0xff] }
 0x8a1   :  { %2011 = vmatmul.mubr.msk.f32.gmra.mxu0 %vm52_vm1, %v51_v9 }
 0x8a2   :  { %657 = vmatprep.mubr.bf16.mxu0 %v2266_v19 }
 0x900   :  { %v502_v37 = vpop.permute.xlu0 %501 }
 0x901   :  { %v504_v38 = vmul.f32 %v2122_v36, %v502_v37 }
 0x903   :  { %506 = vrot.lane.b32.xlu1 %v504_v38, %s2268_s5 }
 0x961   :  { %v2480_v26 = vpop.f32.mrf.mxu0 }
 0x963   :  { %v2012_v27 = vpop.f32.mrf.mxu0 }
 0x975   :  { %v507_v40 = vpop.permute.xlu1 %506 }
 0x976   :  { %v509_v41 = vadd.f32 %v507_v40, %v499_v39 }
 0x978   :  { %2123 = vtanh.f32 %v509_v41 }
 0x985   :  { %v2124_v43 = vpop.eup %2123 }
 0x986   :  { %512 = vrot.lane.b32.xlu0 %v2124_v43, %s2265_s20 }
 0x9f8   :  { %v513_v44 = vpop.permute.xlu0 %512 }
 0x9f9   :  { %v2431_v45 = vmul.f32 %v2122_v36, %v513_v44 }
 0x9fb   :  { %v530_v46 = vpack.c.bf16 %v2431_v45, %v2431_v45  ;;  %529 = vst.msk [vmem:[#allocation2 + $0x18] sm:$0xc] %vm237_vm2, %v2431_v45 }
 0x9fd   :  { %532 = vrot.lane.b32.xlu1 %v530_v46, %s2268_s5 }
 0xa6f   :  { %v533_v49 = vpop.permute.xlu1 %532 }
 0xa70   :  { %1917 = vmatmul.mubr.msk.bf16.vlgmr.msra.gmra.mxu1 %vm263_vm3, %v533_v49 }
 0xa71   :  { %726 = vmatpush1.bf16.msra.mxu1 %v2322_v15  ;;  %745 = vmatprep.mubr.bf16.mxu1 %v2266_v19 }
 0xa72   :  { %727 = vmatprep.subr.bf16.mxu1 %v2327_v16 }
 0xa75   :  { %728 = vmatpush1.bf16.msra.mxu1 %v2338_v18 }
 0xa76   :  { %901 = vmatprep.subr.bf16.mxu1 %v2317_v14 }
 0xb30   :  { %v571_v52 = vpop.f32.mrf.mxu1 }
 0xb32   :  { %v573_v53 = vpop.f32.mrf.mxu1 }
 0xb33   :  { %v578_v54 = vsel %vm31_vm4, %v571_v52, %v573_v53 }
 0xb34   :  { %v579_v55 = vadd.f32 %v578_v54, %v194_v51  ;;  %v575_v56 = vpop.f32.mrf.mxu1 }
 0xb36   :  { %2125 = vtanh.f32 %v579_v55  ;;  %v576_v57 = vpop.f32.mrf.mxu1  ;;  %v1918_v59 = vmul.f32 -1.442695, %v579_v55  ;;  %v196_v55 = vadd.f32 %v176_v21, %v2310_v3 }
 0xb38   :  { %2127 = vpow2.f32 %v1918_v59 }
 0xb43   :  { %v2126_v58 = vpop.eup %2125 }
 0xb44   :  { %589 = vrot.lane.b32.xlu0 %v2126_v58, %s2265_s20 }
 0xb45   :  { %v2128_v60 = vpop.eup %2127 }
 0xb46   :  { %v583_v61 = vadd.f32 1.0, %v2128_v60 }
 0xb48   :  { %2129 = vrcp.f32 %v583_v61 }
 0xb55   :  { %v2130_v14 = vpop.eup %2129 }
 0xb56   :  { %v587_v1 = vmul.f32 %v2130_v14, %v509_v41 }
 0xbb6   :  { %v590_v62 = vpop.permute.xlu0 %589 }
 0xbb7   :  { %v592_v63 = vmul.f32 %v2130_v14, %v590_v62 }
 0xbb9   :  { %594 = vrot.lane.b32.xlu1 %v592_v63, %s2268_s5 }
 0xc2b   :  { %v595_v2 = vpop.permute.xlu1 %594 }
 0xc2c   :  { %v597_v4 = vadd.f32 %v595_v2, %v587_v1 }
 0xc2e   :  { %2131 = vtanh.f32 %v597_v4 }
 0xc3b   :  { %v2132_v8 = vpop.eup %2131 }
 0xc3c   :  { %600 = vrot.lane.b32.xlu0 %v2132_v8, %s2265_s20 }
 0xcae   :  { %v601_v10 = vpop.permute.xlu0 %600 }
 0xcaf   :  { %v2473_v11 = vmul.f32 %v2130_v14, %v601_v10 }
 0xcb1   :  { %v618_v12 = vpack.c.bf16 %v2473_v11, %v2473_v11 }
 0xcb3   :  { %620 = vrot.lane.b32.xlu1 %v618_v12, %s2268_s5  ;;  %v197_v12 = vadd.f32 %v2478_v24, %v2310_v3 }
 0xd25   :  { %v621_v29 = vpop.permute.xlu1 %620 }
 0xd26   :  { %1919 = vmatmul.mubr.msk.bf16.vlgmr.msra.gmra.mxu0 %vm263_vm3, %v621_v29 }
 0xd27   :  { %814 = vmatpush1.bf16.msra.mxu0 %v2322_v15  ;;  %833 = vmatprep.mubr.bf16.mxu0 %v2266_v19 }
 0xd28   :  { %815 = vmatprep.subr.bf16.mxu0 %v2327_v16 }
 0xd2b   :  { %816 = vmatpush1.bf16.msra.mxu0 %v2338_v18 }
 0xd2c   :  { %2013 = vmatprep.subr.mxu0 %v2263_v0 }
 0xde6   :  { %v659_v30 = vpop.f32.mrf.mxu0 }
 0xde8   :  { %v661_v32 = vpop.f32.mrf.mxu0 }
 0xde9   :  { %v666_v33 = vsel %vm31_vm4, %v659_v30, %v661_v32 }
 0xdea   :  { %v667_v34 = vadd.f32 %v666_v33, %v195_v31  ;;  %v663_v35 = vpop.f32.mrf.mxu0 }
 0xdec   :  { %2133 = vtanh.f32 %v667_v34  ;;  %v664_v36 = vpop.f32.mrf.mxu0  ;;  %v1920_v38 = vmul.f32 -1.442695, %v667_v34 }
 0xdee   :  { %2135 = vpow2.f32 %v1920_v38 }
 0xdf9   :  { %v2134_v37 = vpop.eup %2133 }
 0xdfa   :  { %677 = vrot.lane.b32.xlu0 %v2134_v37, %s2265_s20 }
 0xdfb   :  { %v2136_v39 = vpop.eup %2135 }
 0xdfc   :  { %v671_v40 = vadd.f32 1.0, %v2136_v39 }
 0xdfe   :  { %2137 = vrcp.f32 %v671_v40 }
 0xe0b   :  { %v2138_v41 = vpop.eup %2137 }
 0xe0c   :  { %v675_v44 = vmul.f32 %v2138_v41, %v597_v4 }
 0xe6c   :  { %v678_v42 = vpop.permute.xlu0 %677 }
 0xe6d   :  { %v680_v43 = vmul.f32 %v2138_v41, %v678_v42 }
 0xe6f   :  { %682 = vrot.lane.b32.xlu1 %v680_v43, %s2268_s5  ;;  %v198_v43 = vadd.f32 %v2480_v26, %v2310_v3 }
 0xee1   :  { %v683_v46 = vpop.permute.xlu1 %682 }
 0xee2   :  { %v685_v47 = vadd.f32 %v683_v46, %v675_v44 }
 0xee4   :  { %2139 = vtanh.f32 %v685_v47 }
 0xef1   :  { %v2140_v48 = vpop.eup %2139 }
 0xef2   :  { %688 = vrot.lane.b32.xlu0 %v2140_v48, %s2265_s20 }
 0xf64   :  { %v689_v49 = vpop.permute.xlu0 %688 }
 0xf65   :  { %v2494_v51 = vmul.f32 %v2138_v41, %v689_v49 }
 0xf67   :  { %v706_v52 = vpack.c.bf16 %v2494_v51, %v2494_v51 }
 0xf69   :  { %708 = vrot.lane.b32.xlu1 %v706_v52, %s2268_s5 }
 0xfdb   :  { %v709_v53 = vpop.permute.xlu1 %708 }
 0xfdc   :  { %1921 = vmatmul.mubr.msk.bf16.vlgmr.msra.gmra.mxu1 %vm263_vm3, %v709_v53 }
 0xfdd   :  { %902 = vmatpush1.bf16.msra.mxu1 %v2322_v15  ;;  %921 = vmatprep.mubr.bf16.mxu1 %v2266_v19 }
 0xfde   :  { %903 = vmatprep.subr.bf16.mxu1 %v2327_v16 }
 0xfe1   :  { %904 = vmatpush1.bf16.msra.mxu1 %v2338_v18 }
0x109c   :  { %v747_v54 = vpop.f32.mrf.mxu1 }
0x109e   :  { %v749_v56 = vpop.f32.mrf.mxu1 }
0x109f   :  { %v754_v57 = vsel %vm31_vm4, %v747_v54, %v749_v56 }
0x10a0   :  { %v755_v58 = vadd.f32 %v754_v57, %v196_v55  ;;  %v751_v59 = vpop.f32.mrf.mxu1 }
0x10a2   :  { %2141 = vtanh.f32 %v755_v58  ;;  %v752_v60 = vpop.f32.mrf.mxu1  ;;  %v1922_v15 = vmul.f32 -1.442695, %v755_v58 }
0x10a4   :  { %2143 = vpow2.f32 %v1922_v15  ;;  %v984_v15 = vld [vmem:[#allocation3 + $0x78] sm:$0xff] }
0x10af   :  { %v2142_v61 = vpop.eup %2141 }
0x10b0   :  { %765 = vrot.lane.b32.xlu0 %v2142_v61, %s2265_s20  ;;  %v985_v61 = vld [vmem:[#allocation3 + $0x80] sm:$0xff] }
0x10b1   :  { %v2144_v14 = vpop.eup %2143 }
0x10b2   :  { %v759_v16 = vadd.f32 1.0, %v2144_v14  ;;  %v983_v14 = vld [vmem:[#allocation3 + $0x70] sm:$0xff] }
0x10b4   :  { %2145 = vrcp.f32 %v759_v16  ;;  %v982_v16 = vld [vmem:[#allocation3 + $0x68] sm:$0xff] }
0x10c1   :  { %v2146_v18 = vpop.eup %2145 }
0x10c2   :  { %v763_v1 = vmul.f32 %v2146_v18, %v685_v47 }
0x1122   :  { %v766_v62 = vpop.permute.xlu0 %765 }
0x1123   :  { %v768_v63 = vmul.f32 %v2146_v18, %v766_v62  ;;  %v980_v62 = vld [vmem:[#allocation3 + $0x58] sm:$0xff] }
0x1125   :  { %770 = vrot.lane.b32.xlu1 %v768_v63, %s2268_s5 }
0x1197   :  { %v771_v2 = vpop.permute.xlu1 %770 }
0x1198   :  { %v773_v4 = vadd.f32 %v771_v2, %v763_v1  ;;  %v979_v1 = vld [vmem:[#allocation3 + $0x50] sm:$0xff]  ;;  %v978_v2 = vld [vmem:[#allocation3 + $0x48] sm:$0xff] }
0x119a   :  { %2147 = vtanh.f32 %v773_v4 }
0x11a7   :  { %v2148_v5 = vpop.eup %2147 }
0x11a8   :  { %776 = vrot.lane.b32.xlu0 %v2148_v5, %s2265_s20  ;;  %v976_v5 = vld [vmem:[#allocation3 + $0x38] sm:$0xff] }
0x121a   :  { %v777_v6 = vpop.permute.xlu0 %776 }
0x121b   :  { %v2510_v7 = vmul.f32 %v2146_v18, %v777_v6  ;;  %v981_v18 = vld [vmem:[#allocation3 + $0x60] sm:$0xff]  ;;  %v975_v6 = vld [vmem:[#allocation3 + $0x30] sm:$0xff] }
0x121d   :  { %v794_v8 = vpack.c.bf16 %v2510_v7, %v2510_v7 }
0x121f   :  { %796 = vrot.lane.b32.xlu1 %v794_v8, %s2268_s5  ;;  %v974_v8 = vld [vmem:[#allocation3 + $0x28] sm:$0xff] }
0x1291   :  { %v797_v9 = vpop.permute.xlu1 %796 }
0x1292   :  { %1923 = vmatmul.mubr.msk.bf16.vlgmr.msra.gmra.mxu0 %vm263_vm3, %v797_v9  ;;  %v973_v9 = vld [vmem:[#allocation3 + $0x20] sm:$0xff] }
0x1293   :  { %2045 = vmatprep.mubr.msk.f32.mxu0 %vm2264_vm0, %v2263_v0  ;;  %2014 = vmatpush3.msra.mxu0 %v985_v61 }
0x1294   :  { %2015 = vmatprep.subr.mxu0 %v2263_v0 }
0x1295   :  { %2016 = vmatpush3.msra.mxu0 %v984_v15 }
0x1296   :  { %2017 = vmatprep.subr.mxu0 %v2263_v0 }
0x1297   :  { %2018 = vmatpush3.msra.mxu0 %v983_v14 }
0x1298   :  { %2019 = vmatprep.subr.mxu0 %v2263_v0 }
0x1299   :  { %2020 = vmatpush3.msra.mxu0 %v982_v16 }
0x129a   :  { %2021 = vmatprep.subr.mxu0 %v2263_v0 }
0x129b   :  { %2022 = vmatpush3.msra.mxu0 %v981_v18 }
0x129c   :  { %2023 = vmatprep.subr.mxu0 %v2263_v0 }
0x129d   :  { %2024 = vmatpush3.msra.mxu0 %v980_v62 }
0x129e   :  { %2025 = vmatprep.subr.mxu0 %v2263_v0 }
0x129f   :  { %2026 = vmatpush3.msra.mxu0 %v979_v1 }
0x12a0   :  { %2027 = vmatprep.subr.mxu0 %v2263_v0 }
0x12a1   :  { %2028 = vmatpush3.msra.mxu0 %v978_v2 }
0x12a2   :  { %2029 = vmatprep.subr.mxu0 %v2263_v0 }
0x1352   :  { %v835_v10 = vpop.f32.mrf.mxu0 }
0x1354   :  { %v837_v17 = vpop.f32.mrf.mxu0 }
0x1355   :  { %v842_v20 = vsel %vm31_vm4, %v835_v10, %v837_v17  ;;  %v972_v10 = vld [vmem:[#allocation3 + $0x18] sm:$0xff]  ;;  %v970_v17 = vld [vmem:[#allocation3 + $0x8] sm:$0xff] }
0x1356   :  { %v843_v21 = vadd.f32 %v842_v20, %v197_v12  ;;  %v839_v23 = vpop.f32.mrf.mxu0  ;;  %v971_v12 = vld [vmem:[#allocation3 + $0x10] sm:$0xff] }
0x1358   :  { %2149 = vtanh.f32 %v843_v21  ;;  %v840_v25 = vpop.f32.mrf.mxu0  ;;  %v1924_v29 = vmul.f32 -1.442695, %v843_v21 }
0x135a   :  { %2151 = vpow2.f32 %v1924_v29  ;;  %v2567_v29 = vld [vmem:[#allocation3 + $0x90] sm:$0xff] }
0x1365   :  { %v2150_v27 = vpop.eup %2149 }
0x1366   :  { %853 = vrot.lane.b32.xlu0 %v2150_v27, %s2265_s20 }
0x1367   :  { %v2152_v30 = vpop.eup %2151 }
0x1368   :  { %v847_v31 = vadd.f32 1.0, %v2152_v30 }
0x136a   :  { %2153 = vrcp.f32 %v847_v31 }
0x1377   :  { %v2154_v32 = vpop.eup %2153 }
0x1378   :  { %v851_v24 = vmul.f32 %v2154_v32, %v773_v4  ;;  %v977_v4 = vld [vmem:[#allocation3 + $0x40] sm:$0xff] }
0x1379   :  { %2030 = vmatpush3.msra.mxu0 %v977_v4 }
0x137a   :  { %2031 = vmatprep.subr.mxu0 %v2263_v0 }
0x137b   :  { %2032 = vmatpush3.msra.mxu0 %v976_v5 }
0x137c   :  { %2033 = vmatprep.subr.mxu0 %v2263_v0 }
0x137d   :  { %2034 = vmatpush3.msra.mxu0 %v975_v6 }
0x137e   :  { %2035 = vmatprep.subr.mxu0 %v2263_v0 }
0x137f   :  { %2036 = vmatpush3.msra.mxu0 %v974_v8 }
0x1380   :  { %2037 = vmatprep.subr.mxu0 %v2263_v0 }
0x1381   :  { %2038 = vmatpush3.msra.mxu0 %v973_v9 }
0x1382   :  { %2039 = vmatprep.subr.mxu0 %v2263_v0 }
0x1383   :  { %2040 = vmatpush3.msra.mxu0 %v972_v10 }
0x1384   :  { %2041 = vmatprep.subr.mxu0 %v2263_v0 }
0x1385   :  { %2042 = vmatpush3.msra.mxu0 %v971_v12 }
0x1386   :  { %2043 = vmatprep.subr.mxu0 %v2263_v0 }
0x1387   :  { %2044 = vmatpush3.msra.mxu0 %v970_v17 }
0x13d8   :  { %v854_v33 = vpop.permute.xlu0 %853 }
0x13d9   :  { %v856_v34 = vmul.f32 %v2154_v32, %v854_v33 }
0x13db   :  { %858 = vrot.lane.b32.xlu1 %v856_v34, %s2268_s5 }
0x144d   :  { %v859_v35 = vpop.permute.xlu1 %858 }
0x144e   :  { %v861_v36 = vadd.f32 %v859_v35, %v851_v24 }
0x1450   :  { %2155 = vtanh.f32 %v861_v36 }
0x145d   :  { %v2156_v37 = vpop.eup %2155 }
0x145e   :  { %864 = vrot.lane.b32.xlu0 %v2156_v37, %s2265_s20 }
0x14d0   :  { %v865_v38 = vpop.permute.xlu0 %864 }
0x14d1   :  { %v2525_v39 = vmul.f32 %v2154_v32, %v865_v38 }
0x14d3   :  { %v882_v40 = vpack.c.bf16 %v2525_v39, %v2525_v39 }
0x14d5   :  { %884 = vrot.lane.b32.xlu1 %v882_v40, %s2268_s5 }
0x1547   :  { %v885_v41 = vpop.permute.xlu1 %884 }
0x1548   :  { %1925 = vmatmul.mubr.msk.bf16.vlgmr.msra.gmra.mxu1 %vm263_vm3, %v885_v41 }
0x1549   :  { %1211 = vmatprep.mubr.bf16.mxu1 %v2266_v19 }
0x1608   :  { %v923_v42 = vpop.f32.mrf.mxu1 }
0x160a   :  { %v925_v44 = vpop.f32.mrf.mxu1 }
0x160b   :  { %v930_v46 = vsel %vm31_vm4, %v923_v42, %v925_v44  ;;  %v2585_v44 = vld [vmem:[%s2875_s2 + $0x30] ss:$8 sps:$4 sm:$0xff]  }
0x160c   :  { %v931_v47 = vadd.f32 %v930_v46, %v198_v43  ;;  %v927_v48 = vpop.f32.mrf.mxu1  ;;  %v2580_v43 = vld [vmem:[%s2875_s2 + $0x34] ss:$8 sps:$4 sm:$0xff]   ;;  %v2590_v46 = vld [vmem:[%s2875_s2 + $0x24] ss:$8 sps:$4 sm:$0xff]  }
0x160d   :  { %1191 = vmatprep.subr.bf16.mxu1 %v2580_v43 }
0x160e   :  { %2157 = vtanh.f32 %v931_v47  ;;  %v928_v49 = vpop.f32.mrf.mxu1  ;;  %v1926_v53 = vmul.f32 -1.442695, %v931_v47  ;;  %1192 = vmatpush1.bf16.msra.mxu1 %v2585_v44  ;;  %v2598_v47 = vld [vmem:[%s2875_s2 + $0x20] ss:$8 sps:$4 sm:$0xff]  }
0x160f   :  { %1193 = vmatprep.subr.bf16.mxu1 %v2590_v46 }
0x1610   :  { %2159 = vpow2.f32 %v1926_v53 }
0x1612   :  { %1194 = vmatpush1.bf16.msra.mxu1 %v2598_v47 }
0x1613   :  { %1283 = vmatprep.subr.bf16.mxu1 %v2580_v43 }
0x161b   :  { %v2158_v52 = vpop.eup %2157 }
0x161c   :  { %941 = vrot.lane.b32.xlu0 %v2158_v52, %s2265_s20 }
0x161d   :  { %v2160_v54 = vpop.eup %2159 }
0x161e   :  { %v935_v55 = vadd.f32 1.0, %v2160_v54 }
0x1620   :  { %2161 = vrcp.f32 %v935_v55 }
0x162d   :  { %v2162_v56 = vpop.eup %2161 }
0x162e   :  { %v939_v3 = vmul.f32 %v2162_v56, %v861_v36 }
0x168e   :  { %v942_v57 = vpop.permute.xlu0 %941 }
0x168f   :  { %v944_v58 = vmul.f32 %v2162_v56, %v942_v57 }
0x1691   :  { %946 = vrot.lane.b32.xlu1 %v944_v58, %s2268_s5 }
0x1695   :  { %222 = vrot.lane.b32.xlu1 %v2353_v22, %s2268_s5 }
0x1703   :  { %v947_v26 = vpop.permute.xlu1 %946 }
0x1704   :  { %v949_v59 = vadd.f32 %v947_v26, %v939_v3 }
0x1706   :  { %2163 = vtanh.f32 %v949_v59 }
0x1707   :  { %v223_v60 = vpop.permute.xlu1 %222 }
0x1708   :  { %226 = vst.msk [vmem:[#allocation2] sm:$0x3] %vm225_vm5, %v223_v60 }
0x1713   :  { %v2164_v63 = vpop.eup %2163 }
0x1714   :  { %952 = vrot.lane.b32.xlu0 %v2164_v63, %s2265_s20 }
0x1786   :  { %v953_v20 = vpop.permute.xlu0 %952 }
0x1787   :  { %v2557_v21 = vmul.f32 %v2162_v56, %v953_v20 }
0x1789   :  { %965 = vrot.lane.b32.xlu1 %v2557_v21, %s2265_s20  ;;  %961 = vrot.lane.b32.xlu0 %v2557_v21, %s2267_s4 }
0x17fb   :  { %v966_v23 = vpop.permute.xlu1 %965  ;;  %v962_v25 = vpop.permute.xlu0 %961 }
0x17fc   :  { %968 = vst.msk [vmem:[#allocation2 - $0x2] sm:$0xc] %vm235_vm6, %v966_v23 }
0x17fd   :  { %964 = vst.msk [vmem:[#allocation2 + $0x2] sm:$0x3] %vm230_vm7, %v962_v25 }
0x1804   :  { %v987_v27 = vld [vmem:[#allocation2] sm:$0xff] }
0x1805   :  { %2046 = vmatmul.mubr.f32.vlgmr.msra.gmra.mxu0 %v987_v27  ;;  %v2640_v27 = vld [vmem:[#allocation2 + $0x20] sm:$0xff] }
0x1806   :  { %2048 = vmatprep.mubr.msk.f32.mxu0 %vm2264_vm0, %v2263_v0 }
0x18c5   :  { %v1062_v30 = vpop.f32.mrf.mxu0 }
0x18c6   :  { %v1106_v31 = vadd.f32 %v1062_v30, %v2567_v29 }
0x18c7   :  { %v2047_v32 = vpop.f32.mrf.mxu0 }
0x18c8   :  { %2165 = vtanh.f32 %v1106_v31  ;;  %v1927_v34 = vmul.f32 -1.442695, %v1106_v31 }
0x18ca   :  { %2167 = vpow2.f32 %v1927_v34 }
0x18d5   :  { %v2166_v33 = vpop.eup %2165 }
0x18d6   :  { %1127 = vrot.lane.b32.xlu0 %v2166_v33, %s2265_s20 }
0x18d7   :  { %v2168_v24 = vpop.eup %2167 }
0x18d8   :  { %v1122_v35 = vadd.f32 1.0, %v2168_v24 }
0x18da   :  { %341 = vrot.lane.b32.xlu0 %v2381_v50, %s2268_s5  ;;  %2169 = vrcp.f32 %v1122_v35 }
0x18de   :  { %877 = vrot.lane.b32.xlu0 %v2525_v39, %s2265_s20 }
0x18e7   :  { %v2170_v36 = vpop.eup %2169 }
0x1948   :  { %v1128_v37 = vpop.permute.xlu0 %1127 }
0x1949   :  { %v1130_v38 = vmul.f32 %v2170_v36, %v1128_v37 }
0x194b   :  { %2171 = vtanh.f32 %v1130_v38 }
0x194c   :  { %v342_v40 = vpop.permute.xlu0 %341 }
0x194d   :  { %344 = vst.msk [vmem:[#allocation2 + $0x8] sm:$0x3] %vm225_vm5, %v342_v40 }
0x1950   :  { %v878_v41 = vpop.permute.xlu0 %877 }
0x1951   :  { %880 = vst.msk [vmem:[#allocation2 + $0x6] sm:$0xc] %vm235_vm6, %v878_v41 }
0x1958   :  { %v2172_v42 = vpop.eup %2171 }
0x1959   :  { %1133 = vrot.lane.b32.xlu1 %v2172_v42, %s2267_s4 }
0x195d   :  { %873 = vrot.lane.b32.xlu1 %v2525_v39, %s2267_s4 }
0x19cb   :  { %v1134_v48 = vpop.permute.xlu1 %1133 }
0x19cc   :  { %v2605_v49 = vmul.f32 %v2170_v36, %v1134_v48 }
0x19ce   :  { %v1152_v52 = vpack.c.bf16 %v2605_v49, %v2605_v49 }
0x19cf   :  { %v874_v53 = vpop.permute.xlu1 %873 }
0x19d0   :  { %876 = vst.msk [vmem:[#allocation2 + $0xa] sm:$0x3] %vm230_vm7, %v874_v53  ;;  %1154 = vrot.lane.b32.xlu1 %v1152_v52, %s2268_s5 }
0x19d4   :  { %1230 = vrot.lane.b32.xlu1 %v1130_v38, %s2268_s5 }
0x19d7   :  { %v988_v54 = vld [vmem:[#allocation2 + $0x8] sm:$0xff] }
0x19d8   :  { %2049 = vmatmul.mubr.f32.gmra.mxu0 %v988_v54 }
0x19d9   :  { %2051 = vmatprep.mubr.msk.f32.mxu0 %vm2264_vm0, %v2263_v0 }
0x1a42   :  { %v1155_v55 = vpop.permute.xlu1 %1154 }
0x1a43   :  { %1932 = vmatmul.mubr.msk.bf16.vlgmr.msra.gmra.mxu1 %vm263_vm3, %v1155_v55 }
0x1a44   :  { %1284 = vmatpush1.bf16.msra.mxu1 %v2585_v44  ;;  %1303 = vmatprep.mubr.bf16.mxu1 %v2266_v19 }
0x1a45   :  { %1285 = vmatprep.subr.bf16.mxu1 %v2590_v46 }
0x1a46   :  { %v1231_v2 = vpop.permute.xlu1 %1230 }
0x1a48   :  { %1286 = vmatpush1.bf16.msra.mxu1 %v2598_v47 }
0x1a49   :  { %1371 = vmatprep.subr.bf16.mxu1 %v2580_v43 }
0x1a98   :  { %v1067_v56 = vpop.f32.mrf.mxu0 }
0x1a99   :  { %v1107_v3 = vadd.f32 %v1067_v56, %v2567_v29 }
0x1a9a   :  { %v2050_v57 = vpop.f32.mrf.mxu0 }
0x1b03   :  { %v1213_v58 = vpop.f32.mrf.mxu1 }
0x1b05   :  { %v1215_v26 = vpop.f32.mrf.mxu1 }
0x1b06   :  { %v1220_v0 = vsel %vm31_vm4, %v1213_v58, %v1215_v26 }
0x1b07   :  { %v1221_v59 = vadd.f32 %v1220_v0, %v1107_v3  ;;  %v1217_v60 = vpop.f32.mrf.mxu1 }
0x1b09   :  { %2173 = vtanh.f32 %v1221_v59  ;;  %v1218_v61 = vpop.f32.mrf.mxu1  ;;  %v1933_v14 = vmul.f32 -1.442695, %v1221_v59 }
0x1b0b   :  { %2175 = vpow2.f32 %v1933_v14 }
0x1b16   :  { %v2174_v15 = vpop.eup %2173 }
0x1b17   :  { %1235 = vrot.lane.b32.xlu0 %v2174_v15, %s2265_s20 }
0x1b18   :  { %v2176_v16 = vpop.eup %2175 }
0x1b19   :  { %v1225_v18 = vadd.f32 1.0, %v2176_v16 }
0x1b1b   :  { %2177 = vrcp.f32 %v1225_v18 }
0x1b28   :  { %v2178_v62 = vpop.eup %2177 }
0x1b29   :  { %v1233_v4 = vmul.f32 %v2178_v62, %v1231_v2 }
0x1b89   :  { %v1236_v63 = vpop.permute.xlu0 %1235 }
0x1b8a   :  { %v1238_v1 = vmul.f32 %v2178_v62, %v1236_v63 }
0x1b8c   :  { %1240 = vrot.lane.b32.xlu0 %v1238_v1, %s2268_s5 }
0x1b90   :  { %429 = vrot.lane.b32.xlu0 %v2406_v13, %s2268_s5 }
0x1b94   :  { %789 = vrot.lane.b32.xlu0 %v2510_v7, %s2265_s20 }
0x1bfe   :  { %v1241_v5 = vpop.permute.xlu0 %1240 }
0x1bff   :  { %v1243_v6 = vadd.f32 %v1241_v5, %v1233_v4 }
0x1c01   :  { %2179 = vtanh.f32 %v1243_v6 }
0x1c02   :  { %v430_v8 = vpop.permute.xlu0 %429 }
0x1c03   :  { %432 = vst.msk [vmem:[#allocation2 + $0x10] sm:$0x3] %vm225_vm5, %v430_v8 }
0x1c06   :  { %v790_v9 = vpop.permute.xlu0 %789 }
0x1c07   :  { %792 = vst.msk [vmem:[#allocation2 + $0xe] sm:$0xc] %vm235_vm6, %v790_v9 }
0x1c0e   :  { %v2180_v10 = vpop.eup %2179 }
0x1c0f   :  { %1246 = vrot.lane.b32.xlu1 %v2180_v10, %s2265_s20 }
0x1c13   :  { %785 = vrot.lane.b32.xlu1 %v2510_v7, %s2267_s4 }
0x1c81   :  { %v1247_v12 = vpop.permute.xlu1 %1246 }
0x1c82   :  { %v2634_v17 = vmul.f32 %v2178_v62, %v1247_v12 }
0x1c84   :  { %v1264_v20 = vpack.c.bf16 %v2634_v17, %v2634_v17 }
0x1c85   :  { %v786_v23 = vpop.permute.xlu1 %785 }
0x1c86   :  { %788 = vst.msk [vmem:[#allocation2 + $0x12] sm:$0x3] %vm230_vm7, %v786_v23  ;;  %1266 = vrot.lane.b32.xlu1 %v1264_v20, %s2268_s5 }
0x1c8d   :  { %v989_v25 = vld [vmem:[#allocation2 + $0x10] sm:$0xff] }
0x1c8e   :  { %2052 = vmatmul.mubr.f32.gmra.mxu0 %v989_v25 }
0x1c8f   :  { %2054 = vmatprep.mubr.msk.f32.mxu0 %vm2264_vm0, %v2640_v27 }
0x1cf8   :  { %v1267_v30 = vpop.permute.xlu1 %1266 }
0x1cf9   :  { %1934 = vmatmul.mubr.msk.bf16.vlgmr.msra.gmra.mxu1 %vm263_vm3, %v1267_v30 }
0x1cfa   :  { %1372 = vmatpush1.bf16.msra.mxu1 %v2585_v44  ;;  %1391 = vmatprep.mubr.bf16.mxu1 %v2266_v19 }
0x1cfb   :  { %1373 = vmatprep.subr.bf16.mxu1 %v2590_v46 }
0x1cfe   :  { %1374 = vmatpush1.bf16.msra.mxu1 %v2598_v47 }
0x1cff   :  { %1459 = vmatprep.subr.bf16.mxu1 %v2580_v43 }
0x1d4e   :  { %v1072_v31 = vpop.f32.mrf.mxu0 }
0x1d4f   :  { %v1108_v34 = vadd.f32 %v1072_v31, %v2567_v29 }
0x1d50   :  { %v2053_v32 = vpop.f32.mrf.mxu0 }
0x1db9   :  { %v1305_v33 = vpop.f32.mrf.mxu1 }
0x1dbb   :  { %v1307_v24 = vpop.f32.mrf.mxu1 }
0x1dbc   :  { %v1312_v35 = vsel %vm31_vm4, %v1305_v33, %v1307_v24 }
0x1dbd   :  { %v1313_v36 = vadd.f32 %v1312_v35, %v1108_v34  ;;  %v1309_v37 = vpop.f32.mrf.mxu1 }
0x1dbf   :  { %2181 = vtanh.f32 %v1313_v36  ;;  %v1310_v38 = vpop.f32.mrf.mxu1  ;;  %v1935_v41 = vmul.f32 -1.442695, %v1313_v36 }
0x1dc1   :  { %2183 = vpow2.f32 %v1935_v41 }
0x1dcc   :  { %v2182_v40 = vpop.eup %2181 }
0x1dcd   :  { %1323 = vrot.lane.b32.xlu0 %v2182_v40, %s2265_s20 }
0x1dce   :  { %v2184_v42 = vpop.eup %2183 }
0x1dcf   :  { %v1317_v48 = vadd.f32 1.0, %v2184_v42 }
0x1dd1   :  { %2185 = vrcp.f32 %v1317_v48 }
0x1dde   :  { %v2186_v52 = vpop.eup %2185 }
0x1ddf   :  { %v1321_v55 = vmul.f32 %v2186_v52, %v1243_v6 }
0x1e3f   :  { %v1324_v53 = vpop.permute.xlu0 %1323 }
0x1e40   :  { %v1326_v54 = vmul.f32 %v2186_v52, %v1324_v53 }
0x1e42   :  { %1328 = vrot.lane.b32.xlu1 %v1326_v54, %s2268_s5 }
0x1e46   :  { %517 = vrot.lane.b32.xlu1 %v2431_v45, %s2268_s5 }
0x1e4a   :  { %701 = vrot.lane.b32.xlu1 %v2494_v51, %s2265_s20 }
0x1eb4   :  { %v1329_v56 = vpop.permute.xlu1 %1328 }
0x1eb5   :  { %v1331_v57 = vadd.f32 %v1329_v56, %v1321_v55 }
0x1eb7   :  { %2187 = vtanh.f32 %v1331_v57 }
0x1eb8   :  { %v518_v58 = vpop.permute.xlu1 %517 }
0x1eb9   :  { %520 = vst.msk [vmem:[#allocation2 + $0x18] sm:$0x3] %vm225_vm5, %v518_v58 }
0x1ebc   :  { %v702_v3 = vpop.permute.xlu1 %701 }
0x1ebd   :  { %704 = vst.msk [vmem:[#allocation2 + $0x16] sm:$0xc] %vm235_vm6, %v702_v3 }
0x1ec4   :  { %v2188_v26 = vpop.eup %2187 }
0x1ec5   :  { %1334 = vrot.lane.b32.xlu0 %v2188_v26, %s2265_s20 }
0x1ec9   :  { %697 = vrot.lane.b32.xlu0 %v2494_v51, %s2267_s4 }
0x1f37   :  { %v1335_v0 = vpop.permute.xlu0 %1334 }
0x1f38   :  { %v2664_v59 = vmul.f32 %v2186_v52, %v1335_v0 }
0x1f3a   :  { %v1352_v60 = vpack.c.bf16 %v2664_v59, %v2664_v59 }
0x1f3b   :  { %v698_v61 = vpop.permute.xlu0 %697 }
0x1f3c   :  { %700 = vst.msk [vmem:[#allocation2 + $0x1a] sm:$0x3] %vm230_vm7, %v698_v61  ;;  %1354 = vrot.lane.b32.xlu0 %v1352_v60, %s2268_s5 }
0x1f43   :  { %v990_v15 = vld [vmem:[#allocation2 + $0x18] sm:$0xff] }
0x1f44   :  { %2055 = vmatmul.mubr.f32.gmra.mxu0 %v990_v15 }
0x1f45   :  { %2057 = vmatprep.mubr.msk.f32.mxu0 %vm2264_vm0, %v2640_v27 }
0x1fae   :  { %v1355_v14 = vpop.permute.xlu0 %1354 }
0x1faf   :  { %1936 = vmatmul.mubr.msk.bf16.vlgmr.msra.gmra.mxu1 %vm263_vm3, %v1355_v14 }
0x1fb0   :  { %1460 = vmatpush1.bf16.msra.mxu1 %v2585_v44  ;;  %1479 = vmatprep.mubr.bf16.mxu1 %v2266_v19 }
0x1fb1   :  { %1461 = vmatprep.subr.bf16.mxu1 %v2590_v46 }
0x1fb4   :  { %1462 = vmatpush1.bf16.msra.mxu1 %v2598_v47 }
0x1fb5   :  { %1547 = vmatprep.subr.bf16.mxu1 %v2580_v43 }
0x2004   :  { %v1077_v16 = vpop.f32.mrf.mxu0 }
0x2005   :  { %v1109_v63 = vadd.f32 %v1077_v16, %v2567_v29 }
0x2006   :  { %v2056_v18 = vpop.f32.mrf.mxu0 }
0x206f   :  { %v1393_v62 = vpop.f32.mrf.mxu1 }
0x2071   :  { %v1395_v1 = vpop.f32.mrf.mxu1 }
0x2072   :  { %v1400_v2 = vsel %vm31_vm4, %v1393_v62, %v1395_v1 }
0x2073   :  { %v1401_v4 = vadd.f32 %v1400_v2, %v1109_v63  ;;  %v1397_v5 = vpop.f32.mrf.mxu1 }
0x2075   :  { %2189 = vtanh.f32 %v1401_v4  ;;  %v1398_v6 = vpop.f32.mrf.mxu1  ;;  %v1937_v9 = vmul.f32 -1.442695, %v1401_v4 }
0x2077   :  { %2191 = vpow2.f32 %v1937_v9 }
0x2082   :  { %v2190_v8 = vpop.eup %2189 }
0x2083   :  { %1411 = vrot.lane.b32.xlu1 %v2190_v8, %s2265_s20 }
0x2084   :  { %v2192_v10 = vpop.eup %2191 }
0x2085   :  { %v1405_v12 = vadd.f32 1.0, %v2192_v10 }
0x2087   :  { %2193 = vrcp.f32 %v1405_v12 }
0x2094   :  { %v2194_v20 = vpop.eup %2193 }
0x2095   :  { %v1409_v30 = vmul.f32 %v2194_v20, %v1331_v57 }
0x20f5   :  { %v1412_v23 = vpop.permute.xlu1 %1411 }
0x20f6   :  { %v1414_v25 = vmul.f32 %v2194_v20, %v1412_v23 }
0x20f8   :  { %1416 = vrot.lane.b32.xlu0 %v1414_v25, %s2268_s5 }
0x20fc   :  { %605 = vrot.lane.b32.xlu0 %v2473_v11, %s2268_s5 }
0x2100   :  { %613 = vrot.lane.b32.xlu0 %v2473_v11, %s2265_s20 }
0x216a   :  { %v1417_v31 = vpop.permute.xlu0 %1416 }
0x216b   :  { %v1419_v32 = vadd.f32 %v1417_v31, %v1409_v30 }
0x216d   :  { %2195 = vtanh.f32 %v1419_v32 }
0x216e   :  { %v606_v33 = vpop.permute.xlu0 %605 }
0x216f   :  { %608 = vst.msk [vmem:[#allocation2 + $0x20] sm:$0x3] %vm225_vm5, %v606_v33 }
0x2172   :  { %v614_v34 = vpop.permute.xlu0 %613 }
0x2173   :  { %616 = vst.msk [vmem:[#allocation2 + $0x1e] sm:$0xc] %vm235_vm6, %v614_v34 }
0x217a   :  { %v2196_v24 = vpop.eup %2195 }
0x217b   :  { %1422 = vrot.lane.b32.xlu1 %v2196_v24, %s2265_s20 }
0x217f   :  { %609 = vrot.lane.b32.xlu1 %v2473_v11, %s2267_s4 }
0x21ed   :  { %v1423_v35 = vpop.permute.xlu1 %1422 }
0x21ee   :  { %v2692_v36 = vmul.f32 %v2194_v20, %v1423_v35 }
0x21f0   :  { %v1440_v37 = vpack.c.bf16 %v2692_v36, %v2692_v36 }
0x21f1   :  { %v610_v38 = vpop.permute.xlu1 %609 }
0x21f2   :  { %612 = vst.msk [vmem:[#allocation2 + $0x22] sm:$0x3] %vm230_vm7, %v610_v38  ;;  %1442 = vrot.lane.b32.xlu1 %v1440_v37, %s2268_s5 }
0x21f3   :  { %617 = vst.msk [vmem:[#allocation2 + $0x20] sm:$0xc] %vm237_vm2, %v2473_v11 }
0x21fa   :  { %v991_v40 = vld [vmem:[#allocation2 + $0x20] sm:$0xff] }
0x21fb   :  { %2058 = vmatmul.mubr.f32.gmra.mxu0 %v991_v40 }
0x21fc   :  { %2060 = vmatprep.mubr.msk.f32.mxu0 %vm2264_vm0, %v2640_v27 }
0x2264   :  { %v1443_v41 = vpop.permute.xlu1 %1442 }
0x2265   :  { %1938 = vmatmul.mubr.msk.bf16.vlgmr.msra.gmra.mxu1 %vm263_vm3, %v1443_v41 }
0x2266   :  { %1548 = vmatpush1.bf16.msra.mxu1 %v2585_v44  ;;  %1567 = vmatprep.mubr.bf16.mxu1 %v2266_v19 }
0x2267   :  { %1549 = vmatprep.subr.bf16.mxu1 %v2590_v46 }
0x226a   :  { %1550 = vmatpush1.bf16.msra.mxu1 %v2598_v47 }
0x226b   :  { %1635 = vmatprep.subr.bf16.mxu1 %v2580_v43 }
0x22bb   :  { %v1082_v42 = vpop.f32.mrf.mxu0 }
0x22bc   :  { %v1110_v52 = vadd.f32 %v1082_v42, %v2567_v29 }
0x22bd   :  { %v2059_v11 = vpop.f32.mrf.mxu0 }
0x2325   :  { %v1481_v48 = vpop.f32.mrf.mxu1 }
0x2327   :  { %v1483_v53 = vpop.f32.mrf.mxu1 }
0x2328   :  { %v1488_v54 = vsel %vm31_vm4, %v1481_v48, %v1483_v53 }
0x2329   :  { %v1489_v55 = vadd.f32 %v1488_v54, %v1110_v52  ;;  %v1485_v56 = vpop.f32.mrf.mxu1 }
0x232b   :  { %2197 = vtanh.f32 %v1489_v55  ;;  %v1486_v57 = vpop.f32.mrf.mxu1  ;;  %v1939_v3 = vmul.f32 -1.442695, %v1489_v55 }
0x232d   :  { %2199 = vpow2.f32 %v1939_v3 }
0x2338   :  { %v2198_v58 = vpop.eup %2197 }
0x2339   :  { %1499 = vrot.lane.b32.xlu0 %v2198_v58, %s2265_s20 }
0x233a   :  { %v2200_v26 = vpop.eup %2199 }
0x233b   :  { %v1493_v0 = vadd.f32 1.0, %v2200_v26 }
0x233d   :  { %2201 = vrcp.f32 %v1493_v0 }
0x234a   :  { %v2202_v60 = vpop.eup %2201 }
0x234b   :  { %v1497_v14 = vmul.f32 %v2202_v60, %v1419_v32 }
0x23ab   :  { %v1500_v61 = vpop.permute.xlu0 %1499 }
0x23ac   :  { %v1502_v15 = vmul.f32 %v2202_v60, %v1500_v61 }
0x23ae   :  { %1504 = vrot.lane.b32.xlu1 %v1502_v15, %s2268_s5 }
0x23b2   :  { %521 = vrot.lane.b32.xlu1 %v2431_v45, %s2267_s4 }
0x23b6   :  { %693 = vrot.lane.b32.xlu1 %v2494_v51, %s2268_s5 }
0x2420   :  { %v1505_v16 = vpop.permute.xlu1 %1504 }
0x2421   :  { %v1507_v18 = vadd.f32 %v1505_v16, %v1497_v14 }
0x2423   :  { %2203 = vtanh.f32 %v1507_v18 }
0x2424   :  { %v522_v62 = vpop.permute.xlu1 %521 }
0x2425   :  { %524 = vst.msk [vmem:[#allocation2 + $0x2a] sm:$0x3] %vm230_vm7, %v522_v62 }
0x2426   :  { %705 = vst.msk [vmem:[#allocation2 + $0x28] sm:$0xc] %vm237_vm2, %v2494_v51 }
0x2428   :  { %v694_v6 = vpop.permute.xlu1 %693 }
0x2430   :  { %v2204_v63 = vpop.eup %2203 }
0x2431   :  { %1510 = vrot.lane.b32.xlu0 %v2204_v63, %s2265_s20 }
0x2435   :  { %525 = vrot.lane.b32.xlu0 %v2431_v45, %s2265_s20 }
0x24a3   :  { %v1511_v1 = vpop.permute.xlu0 %1510 }
0x24a4   :  { %v2723_v2 = vmul.f32 %v2202_v60, %v1511_v1 }
0x24a6   :  { %v1528_v4 = vpack.c.bf16 %v2723_v2, %v2723_v2 }
0x24a7   :  { %v526_v5 = vpop.permute.xlu0 %525 }
0x24a8   :  { %528 = vst.msk [vmem:[#allocation2 + $0x26] sm:$0xc] %vm235_vm6, %v526_v5  ;;  %1530 = vrot.lane.b32.xlu0 %v1528_v4, %s2268_s5 }
0x24a9   :  { %696 = vst.msk [vmem:[#allocation2 + $0x28] sm:$0x3] %vm225_vm5, %v694_v6 }
0x24b0   :  { %v992_v51 = vld [vmem:[#allocation2 + $0x28] sm:$0xff] }
0x24b1   :  { %2061 = vmatmul.mubr.f32.gmra.mxu0 %v992_v51 }
0x24b2   :  { %2063 = vmatprep.mubr.msk.f32.mxu0 %vm2264_vm0, %v2640_v27 }
0x251a   :  { %v1531_v45 = vpop.permute.xlu0 %1530 }
0x251b   :  { %1940 = vmatmul.mubr.msk.bf16.vlgmr.msra.gmra.mxu1 %vm263_vm3, %v1531_v45 }
0x251c   :  { %1636 = vmatpush1.bf16.msra.mxu1 %v2585_v44  ;;  %1655 = vmatprep.mubr.bf16.mxu1 %v2266_v19 }
0x251d   :  { %1637 = vmatprep.subr.bf16.mxu1 %v2590_v46 }
0x2520   :  { %1638 = vmatpush1.bf16.msra.mxu1 %v2598_v47 }
0x2521   :  { %1723 = vmatprep.subr.bf16.mxu1 %v2580_v43 }
0x2571   :  { %v1087_v8 = vpop.f32.mrf.mxu0 }
0x2572   :  { %v1111_v12 = vadd.f32 %v1087_v8, %v2567_v29 }
0x2573   :  { %v2062_v9 = vpop.f32.mrf.mxu0 }
0x25db   :  { %v1569_v10 = vpop.f32.mrf.mxu1 }
0x25dd   :  { %v1571_v20 = vpop.f32.mrf.mxu1 }
0x25de   :  { %v1576_v23 = vsel %vm31_vm4, %v1569_v10, %v1571_v20 }
0x25df   :  { %v1577_v25 = vadd.f32 %v1576_v23, %v1111_v12  ;;  %v1573_v30 = vpop.f32.mrf.mxu1 }
0x25e1   :  { %2205 = vtanh.f32 %v1577_v25  ;;  %v1574_v31 = vpop.f32.mrf.mxu1  ;;  %v1941_v33 = vmul.f32 -1.442695, %v1577_v25 }
0x25e3   :  { %2207 = vpow2.f32 %v1941_v33 }
0x25ee   :  { %v2206_v32 = vpop.eup %2205 }
0x25ef   :  { %1587 = vrot.lane.b32.xlu1 %v2206_v32, %s2265_s20 }
0x25f0   :  { %v2208_v34 = vpop.eup %2207 }
0x25f1   :  { %v1581_v24 = vadd.f32 1.0, %v2208_v34 }
0x25f3   :  { %2209 = vrcp.f32 %v1581_v24 }
0x2600   :  { %v2210_v35 = vpop.eup %2209 }
0x2601   :  { %v1585_v40 = vmul.f32 %v2210_v35, %v1507_v18 }
0x2661   :  { %v1588_v37 = vpop.permute.xlu1 %1587 }
0x2662   :  { %v1590_v38 = vmul.f32 %v2210_v35, %v1588_v37 }
0x2664   :  { %1592 = vrot.lane.b32.xlu0 %v1590_v38, %s2268_s5 }
0x2668   :  { %433 = vrot.lane.b32.xlu0 %v2406_v13, %s2267_s4 }
0x266c   :  { %781 = vrot.lane.b32.xlu0 %v2510_v7, %s2268_s5 }
0x26d6   :  { %v1593_v41 = vpop.permute.xlu0 %1592 }
0x26d7   :  { %v1595_v42 = vadd.f32 %v1593_v41, %v1585_v40 }
0x26d9   :  { %2211 = vtanh.f32 %v1595_v42 }
0x26da   :  { %v434_v11 = vpop.permute.xlu0 %433 }
0x26db   :  { %436 = vst.msk [vmem:[#allocation2 + $0x32] sm:$0x3] %vm230_vm7, %v434_v11 }
0x26dc   :  { %793 = vst.msk [vmem:[#allocation2 + $0x30] sm:$0xc] %vm237_vm2, %v2510_v7 }
0x26de   :  { %v782_v56 = vpop.permute.xlu0 %781 }
0x26e6   :  { %v2212_v48 = vpop.eup %2211 }
0x26e7   :  { %1598 = vrot.lane.b32.xlu1 %v2212_v48, %s2265_s20 }
0x26eb   :  { %437 = vrot.lane.b32.xlu1 %v2406_v13, %s2265_s20 }
0x2759   :  { %v1599_v52 = vpop.permute.xlu1 %1598 }
0x275a   :  { %v2753_v53 = vmul.f32 %v2210_v35, %v1599_v52 }
0x275c   :  { %v1616_v54 = vpack.c.bf16 %v2753_v53, %v2753_v53 }
0x275d   :  { %v438_v55 = vpop.permute.xlu1 %437 }
0x275e   :  { %440 = vst.msk [vmem:[#allocation2 + $0x2e] sm:$0xc] %vm235_vm6, %v438_v55  ;;  %1618 = vrot.lane.b32.xlu1 %v1616_v54, %s2268_s5 }
0x275f   :  { %784 = vst.msk [vmem:[#allocation2 + $0x30] sm:$0x3] %vm225_vm5, %v782_v56 }
0x2766   :  { %v993_v7 = vld [vmem:[#allocation2 + $0x30] sm:$0xff] }
0x2767   :  { %2064 = vmatmul.mubr.f32.gmra.mxu0 %v993_v7 }
0x2768   :  { %2066 = vmatprep.mubr.msk.f32.mxu0 %vm2264_vm0, %v2640_v27 }
0x27d0   :  { %v1619_v13 = vpop.permute.xlu1 %1618 }
0x27d1   :  { %1942 = vmatmul.mubr.msk.bf16.vlgmr.msra.gmra.mxu1 %vm263_vm3, %v1619_v13 }
0x27d2   :  { %1724 = vmatpush1.bf16.msra.mxu1 %v2585_v44  ;;  %1743 = vmatprep.mubr.bf16.mxu1 %v2266_v19 }
0x27d3   :  { %1725 = vmatprep.subr.bf16.mxu1 %v2590_v46 }
0x27d6   :  { %1726 = vmatpush1.bf16.msra.mxu1 %v2598_v47 }
0x27d7   :  { %1811 = vmatprep.subr.bf16.mxu1 %v2580_v43 }
0x2827   :  { %v1092_v57 = vpop.f32.mrf.mxu0 }
0x2828   :  { %v1112_v26 = vadd.f32 %v1092_v57, %v2567_v29 }
0x2829   :  { %v2065_v58 = vpop.f32.mrf.mxu0 }
0x2891   :  { %v1657_v3 = vpop.f32.mrf.mxu1 }
0x2893   :  { %v1659_v0 = vpop.f32.mrf.mxu1 }
0x2894   :  { %v1664_v60 = vsel %vm31_vm4, %v1657_v3, %v1659_v0 }
0x2895   :  { %v1665_v61 = vadd.f32 %v1664_v60, %v1112_v26  ;;  %v1661_v15 = vpop.f32.mrf.mxu1 }
0x2897   :  { %2213 = vtanh.f32 %v1665_v61  ;;  %v1662_v14 = vpop.f32.mrf.mxu1  ;;  %v1943_v18 = vmul.f32 -1.442695, %v1665_v61 }
0x2899   :  { %2215 = vpow2.f32 %v1943_v18  ;;  %v1137_v18 = vld [vmem:[#allocation3 + $0x98] sm:$0xf] }
0x28a4   :  { %v2214_v16 = vpop.eup %2213 }
0x28a5   :  { %1675 = vrot.lane.b32.xlu0 %v2214_v16, %s2265_s20 }
0x28a6   :  { %v2216_v62 = vpop.eup %2215 }
0x28a7   :  { %v1669_v43 = vadd.f32 1.0, %v2216_v62 }
0x28a9   :  { %2217 = vrcp.f32 %v1669_v43 }
0x28b6   :  { %v2218_v63 = vpop.eup %2217 }
0x28b7   :  { %v1673_v5 = vmul.f32 %v2218_v63, %v1595_v42 }
0x2917   :  { %v1676_v1 = vpop.permute.xlu0 %1675 }
0x2918   :  { %v1678_v4 = vmul.f32 %v2218_v63, %v1676_v1 }
0x291a   :  { %1680 = vrot.lane.b32.xlu1 %v1678_v4, %s2268_s5 }
0x291e   :  { %345 = vrot.lane.b32.xlu1 %v2381_v50, %s2267_s4 }
0x2922   :  { %869 = vrot.lane.b32.xlu1 %v2525_v39, %s2268_s5 }
0x298c   :  { %v1681_v6 = vpop.permute.xlu1 %1680 }
0x298d   :  { %v1683_v51 = vadd.f32 %v1681_v6, %v1673_v5  ;;  %v1250_v6 = vld [vmem:[#allocation3 + $0xa0] sm:$0xf] }
0x298f   :  { %2219 = vtanh.f32 %v1683_v51 }
0x2990   :  { %v346_v45 = vpop.permute.xlu1 %345 }
0x2991   :  { %348 = vst.msk [vmem:[#allocation2 + $0x3a] sm:$0x3] %vm230_vm7, %v346_v45 }
0x2992   :  { %881 = vst.msk [vmem:[#allocation2 + $0x38] sm:$0xc] %vm237_vm2, %v2525_v39 }
0x2994   :  { %v870_v23 = vpop.permute.xlu1 %869 }
0x299c   :  { %v2220_v8 = vpop.eup %2219 }
0x299d   :  { %1686 = vrot.lane.b32.xlu0 %v2220_v8, %s2265_s20 }
0x29a1   :  { %349 = vrot.lane.b32.xlu0 %v2381_v50, %s2265_s20 }
0x2a0f   :  { %v1687_v9 = vpop.permute.xlu0 %1686 }
0x2a10   :  { %v2783_v10 = vmul.f32 %v2218_v63, %v1687_v9 }
0x2a12   :  { %v1704_v12 = vpack.c.bf16 %v2783_v10, %v2783_v10 }
0x2a13   :  { %v350_v20 = vpop.permute.xlu0 %349 }
0x2a14   :  { %352 = vst.msk [vmem:[#allocation2 + $0x36] sm:$0xc] %vm235_vm6, %v350_v20  ;;  %1706 = vrot.lane.b32.xlu0 %v1704_v12, %s2268_s5  ;;  %v1338_v20 = vld [vmem:[#allocation3 + $0xa8] sm:$0xf] }
0x2a15   :  { %872 = vst.msk [vmem:[#allocation2 + $0x38] sm:$0x3] %vm225_vm5, %v870_v23  ;;  %v1602_v23 = vld [vmem:[#allocation3 + $0xc0] sm:$0xf] }
0x2a1c   :  { %v994_v39 = vld [vmem:[#allocation2 + $0x38] sm:$0xff] }
0x2a1d   :  { %2067 = vmatmul.mubr.f32.gmra.mxu0 %v994_v39  ;;  %v1690_v39 = vld [vmem:[#allocation3 + $0xc8] sm:$0xf] }
0x2a1e   :  { %2069 = vmatprep.mubr.msk.f32.mxu0 %vm2264_vm0, %v2640_v27 }
0x2a86   :  { %v1707_v50 = vpop.permute.xlu0 %1706 }
0x2a87   :  { %1944 = vmatmul.mubr.msk.bf16.vlgmr.msra.gmra.mxu1 %vm263_vm3, %v1707_v50 }
0x2a88   :  { %1812 = vmatpush1.bf16.msra.mxu1 %v2585_v44  ;;  %1831 = vmatprep.mubr.bf16.mxu1 %v2266_v19 }
0x2a89   :  { %1813 = vmatprep.subr.bf16.mxu1 %v2590_v46 }
0x2a8c   :  { %1814 = vmatpush1.bf16.msra.mxu1 %v2598_v47 }
0x2add   :  { %v1097_v25 = vpop.f32.mrf.mxu0 }
0x2ade   :  { %v1113_v32 = vadd.f32 %v1097_v25, %v2567_v29 }
0x2adf   :  { %v2068_v30 = vpop.f32.mrf.mxu0 }
0x2b47   :  { %v1745_v31 = vpop.f32.mrf.mxu1 }
0x2b49   :  { %v1747_v33 = vpop.f32.mrf.mxu1 }
0x2b4a   :  { %v1752_v27 = vsel %vm31_vm4, %v1745_v31, %v1747_v33  ;;  %v1426_v31 = vld [vmem:[#allocation3 + $0xb0] sm:$0xf] }
0x2b4b   :  { %v1753_v34 = vadd.f32 %v1752_v27, %v1113_v32  ;;  %v1749_v24 = vpop.f32.mrf.mxu1  ;;  %v1778_v33 = vld [vmem:[#allocation3 + $0xd0] sm:$0xf] }
0x2b4c   :  { %v1866_v24 = vld [vmem:[#allocation3 + $0xd8] sm:$0xf] }
0x2b4d   :  { %2221 = vtanh.f32 %v1753_v34  ;;  %v1750_v35 = vpop.f32.mrf.mxu1  ;;  %v1945_v19 = vmul.f32 -1.442695, %v1753_v34 }
0x2b4f   :  { %2223 = vpow2.f32 %v1945_v19 }
0x2b5a   :  { %v2222_v44 = vpop.eup %2221 }
0x2b5b   :  { %1763 = vrot.lane.b32.xlu1 %v2222_v44, %s2265_s20 }
0x2b5c   :  { %v2224_v46 = vpop.eup %2223 }
0x2b5d   :  { %v1757_v47 = vadd.f32 1.0, %v2224_v46 }
0x2b5f   :  { %2225 = vrcp.f32 %v1757_v47 }
0x2b6c   :  { %v2226_v37 = vpop.eup %2225 }
0x2b6d   :  { %v1761_v41 = vmul.f32 %v2226_v37, %v1683_v51 }
0x2bcd   :  { %v1764_v38 = vpop.permute.xlu1 %1763 }
0x2bce   :  { %v1766_v40 = vmul.f32 %v2226_v37, %v1764_v38 }
0x2bd0   :  { %1768 = vrot.lane.b32.xlu0 %v1766_v40, %s2268_s5 }
0x2bd4   :  { %227 = vrot.lane.b32.xlu0 %v2353_v22, %s2267_s4 }
0x2bd8   :  { %957 = vrot.lane.b32.xlu0 %v2557_v21, %s2268_s5 }
0x2c42   :  { %v1769_v42 = vpop.permute.xlu0 %1768 }
0x2c43   :  { %v2806_v11 = vadd.f32 %v1769_v42, %v1761_v41 }
0x2c45   :  { %2227 = vtanh.f32 %v2806_v11 }
0x2c46   :  { %v228_v48 = vpop.permute.xlu0 %227 }
0x2c47   :  { %231 = vst.msk [vmem:[#allocation2 + $0x42] sm:$0x3] %vm230_vm7, %v228_v48 }
0x2c48   :  { %969 = vst.msk [vmem:[#allocation2 + $0x40] sm:$0xc] %vm237_vm2, %v2557_v21 }
0x2c4a   :  { %v958_v13 = vpop.permute.xlu0 %957 }
0x2c52   :  { %v2228_v52 = vpop.eup %2227 }
0x2c53   :  { %1774 = vrot.lane.b32.xlu1 %v2228_v52, %s2265_s20 }
0x2c57   :  { %232 = vrot.lane.b32.xlu1 %v2353_v22, %s2265_s20 }
0x2cc5   :  { %v1775_v54 = vpop.permute.xlu1 %1774 }
0x2cc6   :  { %v2815_v55 = vmul.f32 %v2226_v37, %v1775_v54 }
0x2cc8   :  { %v1792_v56 = vpack.c.bf16 %v2815_v55, %v2815_v55 }
0x2cc9   :  { %v233_v7 = vpop.permute.xlu1 %232 }
0x2cca   :  { %236 = vst.msk [vmem:[#allocation2 + $0x3e] sm:$0xc] %vm235_vm6, %v233_v7  ;;  %1794 = vrot.lane.b32.xlu1 %v1792_v56, %s2268_s5 }
0x2ccb   :  { %960 = vst.msk [vmem:[#allocation2 + $0x40] sm:$0x3] %vm225_vm5, %v958_v13 }
0x2cd2   :  { %v995_v21 = vld [vmem:[#allocation2 + $0x40] sm:$0xff] }
0x2cd3   :  { %2070 = vmatmul.mubr.f32.gmra.mxu0 %v995_v21 }
0x2d3c   :  { %v1795_v57 = vpop.permute.xlu1 %1794 }
0x2d3d   :  { %1946 = vmatmul.mubr.msk.bf16.vlgmr.msra.gmra.mxu1 %vm263_vm3, %v1795_v57 }
0x2d93   :  { %v1102_v22 = vpop.f32.mrf.mxu0 }
0x2d94   :  { %v1114_v26 = vadd.f32 %v1102_v22, %v2567_v29 }
0x2d95   :  { %v2071_v58 = vpop.f32.mrf.mxu0 }
0x2dfd   :  { %v1833_v3 = vpop.f32.mrf.mxu1 }
0x2dff   :  { %v1835_v0 = vpop.f32.mrf.mxu1 }
0x2e00   :  { %v1840_v60 = vsel %vm31_vm4, %v1833_v3, %v1835_v0 }
0x2e01   :  { %v1841_v61 = vadd.f32 %v1840_v60, %v1114_v26  ;;  %v1837_v15 = vpop.f32.mrf.mxu1 }
0x2e03   :  { %2229 = vtanh.f32 %v1841_v61  ;;  %v1838_v14 = vpop.f32.mrf.mxu1  ;;  %v1947_v62 = vmul.f32 -1.442695, %v1841_v61 }
0x2e05   :  { %2231 = vpow2.f32 %v1947_v62 }
0x2e10   :  { %v2230_v16 = vpop.eup %2229 }
0x2e11   :  { %1851 = vrot.lane.b32.xlu0 %v2230_v16, %s2265_s20 }
0x2e12   :  { %v2232_v43 = vpop.eup %2231 }
0x2e13   :  { %v1845_v63 = vadd.f32 1.0, %v2232_v43 }
0x2e15   :  { %1139 = vrot.lane.b32.xlu0 %v1137_v18, %s2267_s4  ;;  %2233 = vrcp.f32 %v1845_v63 }
0x2e22   :  { %v2828_v29 = vpop.eup %2233 }
0x2e83   :  { %v1852_v1 = vpop.permute.xlu0 %1851 }
0x2e84   :  { %v1854_v28 = vmul.f32 %v2828_v29, %v1852_v1 }
0x2e86   :  { %1856 = vrot.lane.b32.xlu1 %v1854_v28, %s2268_s5 }
0x2e87   :  { %v1140_v4 = vpop.permute.xlu0 %1139 }
0x2e88   :  { %v1142_v5 = vmul.f32 %v1140_v4, %v2605_v49  ;;  %v1514_v49 = vld [vmem:[#allocation3 + $0xb8] sm:$0xf] }
0x2e8a   :  { %1144 = vrot.lane.b32.xlu1 %v1142_v5, %s2268_s5 }
0x2e8e   :  { %1252 = vrot.lane.b32.xlu1 %v1250_v6, %s2267_s4 }
0x2ef8   :  { %v1857_v51 = vpop.permute.xlu1 %1856 }
0x2efc   :  { %v1145_v45 = vpop.permute.xlu1 %1144 }
0x2efd   :  { %v1148_v8 = vsel %vm1147_vm8, %v1145_v45, 0.0  ;;  %v1948_v45 = vld [vmem:[#allocation3 + $0xe0] ss:$0 sm:$0xff] }
0x2efe   :  { %1149 = vadd.xlane.f32.xlu0 %v1148_v8 }
0x2f00   :  { %v1253_v9 = vpop.permute.xlu1 %1252 }
0x2f01   :  { %v1255_v12 = vmul.f32 %v1253_v9, %v2634_v17  ;;  %v1849_v17 = vmul.f32 %v2828_v29, %v2806_v11 }
0x2f03   :  { %1257 = vrot.lane.b32.xlu1 %v1255_v12, %s2268_s5  ;;  %v1859_v30 = vadd.f32 %v1857_v51, %v1849_v17 }
0x2f05   :  { %2235 = vtanh.f32 %v1859_v30 }
0x2f12   :  { %v2236_v35 = vpop.eup %2235 }
0x2f14   :  { %1340 = vrot.lane.b32.xlu0 %v1338_v20, %s2267_s4 }
0x2f18   :  { %1516 = vrot.lane.b32.xlu0 %v1514_v49, %s2267_s4 }
0x2f1c   :  { %1604 = vrot.lane.b32.xlu0 %v1602_v23, %s2267_s4 }
0x2f20   :  { %1692 = vrot.lane.b32.xlu0 %v1690_v39, %s2267_s4 }
0x2f75   :  { %v1258_v50 = vpop.permute.xlu1 %1257 }
0x2f76   :  { %v1260_v25 = vsel %vm1147_vm8, %v1258_v50, 0.0 }
0x2f77   :  { %1261 = vadd.xlane.f32.xlu1 %v1260_v25 }
0x2f87   :  { %v1150_v32 = vpop.xlane.xlu0 %1149 }
0x2f88   :  { %1428 = vrot.lane.b32.xlu1 %v1426_v31, %s2267_s4 }
0x2f8b   :  { %v1341_v27 = vpop.permute.xlu0 %1340 }
0x2f8c   :  { %v1343_v34 = vmul.f32 %v1341_v27, %v2664_v59  ;;  %1780 = vrot.lane.b32.xlu1 %v1778_v33, %s2267_s4 }
0x2f8e   :  { %1345 = vrot.lane.b32.xlu0 %v1343_v34, %s2268_s5 }
0x2f8f   :  { %v1517_v44 = vpop.permute.xlu0 %1516 }
0x2f90   :  { %1868 = vrot.lane.b32.xlu1 %v1866_v24, %s2267_s4  ;;  %v1519_v41 = vmul.f32 %v1517_v44, %v2723_v2 }
0x2f92   :  { %1862 = vrot.lane.b32.xlu0 %v2236_v35, %s2265_s20 }
0x2f93   :  { %v1605_v19 = vpop.permute.xlu0 %1604 }
0x2f94   :  { %v1607_v21 = vmul.f32 %v1605_v19, %v2753_v53 }
0x2f97   :  { %v1693_v46 = vpop.permute.xlu0 %1692 }
0x2f98   :  { %v1695_v42 = vmul.f32 %v1693_v46, %v2783_v10 }
0x3000   :  { %v1346_v47 = vpop.permute.xlu0 %1345  ;;  %v1262_v37 = vpop.xlane.xlu1 %1261 }
0x3001   :  { %v1348_v38 = vsel %vm1147_vm8, %v1346_v47, 0.0  ;;  %v1263_v7 = vadd.f32 %v1262_v37, %v1150_v32 }
0x3002   :  { %1349 = vadd.xlane.f32.xlu1 %v1348_v38 }
0x3004   :  { %v1429_v40 = vpop.permute.xlu1 %1428  ;;  %v1863_v52 = vpop.permute.xlu0 %1862 }
0x3005   :  { %v1431_v59 = vmul.f32 %v1429_v40, %v2692_v36  ;;  %v1865_v22 = vmul.f32 %v2828_v29, %v1863_v52 }
0x3007   :  { %1433 = vrot.lane.b32.xlu0 %v1431_v59, %s2268_s5 }
0x3008   :  { %v1781_v11 = vpop.permute.xlu1 %1780 }
0x3009   :  { %v1783_v48 = vmul.f32 %v1781_v11, %v2815_v55 }
0x300c   :  { %v1869_v36 = vpop.permute.xlu1 %1868 }
0x300d   :  { %v1871_v55 = vmul.f32 %v1869_v36, %v1865_v22 }
0x3013   :  { %1521 = vrot.lane.b32.xlu1 %v1519_v41, %s2268_s5 }
0x3017   :  { %1697 = vrot.lane.b32.xlu1 %v1695_v42, %s2268_s5 }
0x301b   :  { %1785 = vrot.lane.b32.xlu1 %v1783_v48, %s2268_s5 }
0x3079   :  { %v1434_v54 = vpop.permute.xlu0 %1433 }
0x307a   :  { %v1436_v56 = vsel %vm1147_vm8, %v1434_v54, 0.0 }
0x307b   :  { %1437 = vadd.xlane.f32.xlu0 %v1436_v56 }
0x308b   :  { %v1350_v13 = vpop.xlane.xlu1 %1349 }
0x308c   :  { %v1351_v2 = vadd.f32 %v1350_v13, %v1263_v7 }
0x308f   :  { %v1522_v57 = vpop.permute.xlu1 %1521 }
0x3090   :  { %v1524_v10 = vsel %vm1147_vm8, %v1522_v57, 0.0 }
0x3091   :  { %1525 = vadd.xlane.f32.xlu1 %v1524_v10  ;;  %1609 = vrot.lane.b32.xlu0 %v1607_v21, %s2268_s5 }
0x3093   :  { %v1698_v58 = vpop.permute.xlu1 %1697 }
0x3094   :  { %v1700_v15 = vsel %vm1147_vm8, %v1698_v58, 0.0 }
0x3095   :  { %1873 = vrot.lane.b32.xlu0 %v1871_v55, %s2268_s5 }
0x3097   :  { %v1786_v3 = vpop.permute.xlu1 %1785 }
0x3098   :  { %v1788_v26 = vsel %vm1147_vm8, %v1786_v3, 0.0 }
0x3099   :  { %1789 = vadd.xlane.f32.xlu1 %v1788_v26 }
0x3104   :  { %v1438_v0 = vpop.xlane.xlu0 %1437 }
0x3105   :  { %v1439_v60 = vadd.f32 %v1438_v0, %v1351_v2 }
0x3108   :  { %v1610_v61 = vpop.permute.xlu0 %1609 }
0x3109   :  { %v1612_v53 = vsel %vm1147_vm8, %v1610_v61, 0.0 }
0x310a   :  { %1613 = vadd.xlane.f32.xlu0 %v1612_v53 }
0x310c   :  { %v1874_v14 = vpop.permute.xlu0 %1873 }
0x310d   :  { %v1876_v16 = vsel %vm1147_vm8, %v1874_v14, 0.0 }
0x310e   :  { %1701 = vadd.xlane.f32.xlu0 %v1700_v15 }
0x3112   :  { %1877 = vadd.xlane.f32.xlu0 %v1876_v16 }
0x311a   :  { %v1526_v18 = vpop.xlane.xlu1 %1525 }
0x311b   :  { %v1527_v43 = vadd.f32 %v1526_v18, %v1439_v60 }
0x3122   :  { %v1790_v28 = vpop.xlane.xlu1 %1789 }
0x3193   :  { %v1614_v62 = vpop.xlane.xlu0 %1613 }
0x3194   :  { %v1615_v63 = vadd.f32 %v1614_v62, %v1527_v43 }
0x3197   :  { %v1702_v29 = vpop.xlane.xlu0 %1701 }
0x3198   :  { %v1703_v1 = vadd.f32 %v1702_v29, %v1615_v63 }
0x319a   :  { %v1791_v4 = vadd.f32 %v1790_v28, %v1703_v1 }
0x319b   :  { %v1878_v5 = vpop.xlane.xlu0 %1877 }
0x319c   :  { %v1879_v6 = vadd.f32 %v1878_v5, %v1791_v4 }
0x319e   :  { %v1882_v51 = vrot.slane %v1879_v6, 2 }
0x31a0   :  { %v1884_v8 = vadd.f32 %v1882_v51, %v1879_v6 }
0x31a2   :  { %v1889_v9 = vadd.f32 %v1948_v45, %v1884_v8 }
0x31a4   :  { %1891 = vst.msk [vmem:[%s2876_s3] sm:$0x3] %vm1890_vm9, %v1889_v9 }
0x31a5   :  { %1896 = vsyncpa [#allocation4], 1 }

</bundles_post_ra>
